<compile_context>
chip_gen: v5e
topology: v5e:2x2
jax: 0.10.0
libtpu: 0.0.40
codegen_flags: <defaults>
</compile_context>

<pallas_src>
import functools

import jax
import jax.numpy as jnp
from jax.experimental import pallas as pl
from jax.experimental.pallas import tpu as pltpu

D_MODEL = 64
NHEAD = 8                # only affects the (degenerate) attention split; unused in math
DIM_FF = 2048            # nn.TransformerEncoderLayer default dim_feedforward
NUM_LAYERS = 2
LN_EPS = 1e-5            # nn.LayerNorm default eps
OUT_PAD = 128            # lane-dense padded width for the final (d_model -> 1) layer


# -----------------------------------------------------------------------------
# Fused Pallas kernel: input_proj -> [attn(+res+LN) -> FF(+res+LN)] x L -> output
# -----------------------------------------------------------------------------
def _fused_forward_kernel(*refs, num_layers):
    # refs layout (inputs..., output):
    #   x, in_w, in_b,
    #   (w_att, b_att, ln1_g, ln1_b, w1, b1, w2, b2, ln2_g, ln2_b) * num_layers,
    #   out_w_pad, out_b_pad, o_ref
    it = iter(refs)
    x_ref = next(it)
    in_w = next(it)
    in_b = next(it)
    layers = [tuple(next(it) for _ in range(10)) for _ in range(num_layers)]
    out_w = next(it)
    out_b = next(it)
    o_ref = next(it)

    def layer_norm(z, g_ref, b_ref):
        mean = jnp.mean(z, axis=-1, keepdims=True)
        cen = z - mean
        var = jnp.mean(cen * cen, axis=-1, keepdims=True)
        return cen * jax.lax.rsqrt(var + LN_EPS) * g_ref[...] + b_ref[...]

    bf16 = jnp.bfloat16

    # input_proj (bf16 x bf16 -> f32 accumulate, native MXU path)
    h = jnp.dot(x_ref[...].astype(bf16), in_w[...],
                preferred_element_type=jnp.float32) + in_b[...]

    # encoder layers (post-norm; seq_len == 1 => attention output == out_proj(V);
    # residual folded into w_att = I + wv@wo at param-prep time)
    for (w_att, b_att, g1, bt1, w1, b1, w2, b2, g2, bt2) in layers:
        z = jnp.dot(h.astype(bf16), w_att[...],
                    preferred_element_type=jnp.float32) + b_att[...]
        h = layer_norm(z, g1, bt1)

        f = jnp.dot(h.astype(bf16), w1[...],
                    preferred_element_type=jnp.float32) + b1[...]
        f = jnp.maximum(f, 0.0)
        f = jnp.dot(f.astype(bf16), w2[...],
                    preferred_element_type=jnp.float32) + b2[...]
        h = layer_norm(h + f, g2, bt2)

    # output_layer (zero-padded to OUT_PAD lanes for an unmasked lane-dense store)
    o_ref[...] = jnp.dot(h.astype(bf16), out_w[...],
                         preferred_element_type=jnp.float32) + out_b[...]


# -----------------------------------------------------------------------------
# Row tiling: fixed tiles, never block_n == N for large N
# -----------------------------------------------------------------------------
def _round_up(v, m):
    return ((v + m - 1) // m) * m


def _choose_tiling(n):
    """Return (block_n, padded_n).

    * Small N (<= 256): one tile, rows padded to a multiple of 8.
    * Larger N: fixed-size row tiles capped at 512 (bounded (block_n, 2048) f32
      FF intermediate on v7x's 64 MiB VMEM) with >= 2 grid steps so the
      'parallel' axis shards across v7x's two TensorCores and pipelines DMA.
    """
    if n <= 256:
        padded = _round_up(max(n, 8), 8)
        return padded, padded
    block = min(512, _round_up(pl.cdiv(n, 2), 8))
    padded = _round_up(n, block)
    return block, padded


def bayesian_transformer_forward(flat_params, x):
    """x: (N, input_size) float32 -> (N, 1) float32."""
    n, input_size = x.shape
    block_n, padded_n = _choose_tiling(n)
    if padded_n != n:
        x = jnp.zeros((padded_n, input_size), x.dtype).at[:n].set(x)
    grid = (padded_n // block_n,)

    in_specs = [pl.BlockSpec((block_n, input_size), lambda i: (i, 0))]
    in_specs += [pl.BlockSpec(p.shape, lambda i: (0, 0)) for p in flat_params]

    out = pl.pallas_call(
        functools.partial(_fused_forward_kernel, num_layers=NUM_LAYERS),
        out_shape=jax.ShapeDtypeStruct((padded_n, OUT_PAD), jnp.float32),
        grid=grid,
        in_specs=in_specs,
        out_specs=pl.BlockSpec((block_n, OUT_PAD), lambda i: (i, 0)),
        compiler_params=pltpu.CompilerParams(
            dimension_semantics=("parallel",),
            vmem_limit_bytes=48 * 1024 * 1024),
    )(x, *flat_params)
    return out[:n, :1]


# -----------------------------------------------------------------------------
# Parameter init (PyTorch nn.Linear-style) + one-time kernel-side param prep
# -----------------------------------------------------------------------------
def _linear_params(key, fan_in, fan_out):
    kw, kb = jax.random.split(key)
    bound = 1.0 / jnp.sqrt(jnp.float32(fan_in))
    w = jax.random.uniform(kw, (fan_in, fan_out), jnp.float32, -bound, bound)
    b = jax.random.uniform(kb, (fan_out,), jnp.float32, -bound, bound)
    return w, b


def init_params(key, input_size):
    keys = jax.random.split(key, 2 + NUM_LAYERS)
    params = {}
    params["in_w"], params["in_b"] = _linear_params(keys[0], input_size, D_MODEL)
    params["out_w"], params["out_b"] = _linear_params(keys[1], D_MODEL, 1)
    layers = []
    for li in range(NUM_LAYERS):
        lk = jax.random.split(keys[2 + li], 6)
        lp = {}
        # q/k projections are dead when seq_len == 1 (kept only for parameter parity)
        lp["wq"], lp["bq"] = _linear_params(lk[0], D_MODEL, D_MODEL)
        lp["wk"], lp["bk"] = _linear_params(lk[1], D_MODEL, D_MODEL)
        lp["wv"], lp["bv"] = _linear_params(lk[2], D_MODEL, D_MODEL)
        lp["wo"], lp["bo"] = _linear_params(lk[3], D_MODEL, D_MODEL)
        lp["w1"], lp["b1"] = _linear_params(lk[4], D_MODEL, DIM_FF)
        lp["w2"], lp["b2"] = _linear_params(lk[5], DIM_FF, D_MODEL)
        lp["ln1_g"] = jnp.ones((D_MODEL,), jnp.float32)
        lp["ln1_b"] = jnp.zeros((D_MODEL,), jnp.float32)
        lp["ln2_g"] = jnp.ones((D_MODEL,), jnp.float32)
        lp["ln2_b"] = jnp.zeros((D_MODEL,), jnp.float32)
        layers.append(lp)
    params["layers"] = layers
    return params


def prepare_params(params):
    """One-time host-side transform: fold (I + wv@wo), cast every matmul weight to
    bf16 (biases / LN params stay f32), reshape biases to (1, D), pad the output
    layer to OUT_PAD lanes."""
    flat = [params["in_w"].astype(jnp.bfloat16), params["in_b"].reshape(1, -1)]
    eye = jnp.eye(D_MODEL, dtype=jnp.float32)
    for lp in params["layers"]:
        w_att = (eye + lp["wv"] @ lp["wo"]).astype(jnp.bfloat16)        # (64, 64)
        b_att = (lp["bv"] @ lp["wo"] + lp["bo"]).reshape(1, -1)         # (1, 64)
        flat += [
            w_att, b_att,
            lp["ln1_g"].reshape(1, -1), lp["ln1_b"].reshape(1, -1),
            lp["w1"].astype(jnp.bfloat16), lp["b1"].reshape(1, -1),
            lp["w2"].astype(jnp.bfloat16), lp["b2"].reshape(1, -1),
            lp["ln2_g"].reshape(1, -1), lp["ln2_b"].reshape(1, -1),
        ]
    out_w_pad = (jnp.zeros((D_MODEL, OUT_PAD), jnp.float32)
                 .at[:, :1].set(params["out_w"])).astype(jnp.bfloat16)
    out_b_pad = jnp.zeros((1, OUT_PAD), jnp.float32).at[:, :1].set(
        params["out_b"].reshape(1, 1))
    flat += [out_w_pad, out_b_pad]
    return flat


# -----------------------------------------------------------------------------
# Pure-JAX reference (mirrors the kernel's bf16 matmul path exactly)
# -----------------------------------------------------------------------------
def reference_forward(params, x):
    def dot_bf16(a, w):
        return jnp.dot(a.astype(jnp.bfloat16), w.astype(jnp.bfloat16),
                       preferred_element_type=jnp.float32)

    def ln(z, g, b):
        m = jnp.mean(z, axis=-1, keepdims=True)
        c = z - m
        v = jnp.mean(c * c, axis=-1, keepdims=True)
        return c * jax.lax.rsqrt(v + LN_EPS) * g + b

    h = dot_bf16(x, params["in_w"]) + params["in_b"]
    eye = jnp.eye(D_MODEL, dtype=jnp.float32)
    for lp in params["layers"]:
        # seq_len == 1: attention weights == 1 -> output is out_proj(V); residual folded.
        w_att = eye + lp["wv"] @ lp["wo"]
        b_att = lp["bv"] @ lp["wo"] + lp["bo"]
        h = ln(dot_bf16(h, w_att) + b_att, lp["ln1_g"], lp["ln1_b"])
        f = jnp.maximum(dot_bf16(h, lp["w1"]) + lp["b1"], 0.0)
        f = dot_bf16(f, lp["w2"]) + lp["b2"]
        h = ln(h + f, lp["ln2_g"], lp["ln2_b"])
    return dot_bf16(h, params["out_w"]) + params["out_b"]


if __name__ == "__main__":
    key = jax.random.PRNGKey(0)
    input_size = 16
    n = 8  # samples -> batch of the seq-len-1 transformer

    pkey, xkey = jax.random.split(key)
    params = init_params(pkey, input_size)
    flat_params = prepare_params(params)
    x = jax.random.normal(xkey, (n, input_size), dtype=jnp.float32)

    out = jax.jit(bayesian_transformer_forward)(flat_params, x)
    out = jax.block_until_ready(out)

    ref = reference_forward(params, x)
    assert out.shape == (n, 1), out.shape
    assert jnp.allclose(out, ref, atol=2e-3, rtol=2e-3), (
        "Pallas output mismatch vs reference")
    print("KERNEL_OK")
</pallas_src>

<mosaic_0001>
module attributes {stable_mosaic.version = 11 : i64} {
  func.func @_fused_forward_kernel(%arg0: i32, %arg1: memref<8x16xf32, #tpu.memory_space<vmem>>, %arg2: memref<16x64xbf16, #tpu.memory_space<vmem>>, %arg3: memref<1x64xf32, #tpu.memory_space<vmem>>, %arg4: memref<64x64xbf16, #tpu.memory_space<vmem>>, %arg5: memref<1x64xf32, #tpu.memory_space<vmem>>, %arg6: memref<1x64xf32, #tpu.memory_space<vmem>>, %arg7: memref<1x64xf32, #tpu.memory_space<vmem>>, %arg8: memref<64x2048xbf16, #tpu.memory_space<vmem>>, %arg9: memref<1x2048xf32, #tpu.memory_space<vmem>>, %arg10: memref<2048x64xbf16, #tpu.memory_space<vmem>>, %arg11: memref<1x64xf32, #tpu.memory_space<vmem>>, %arg12: memref<1x64xf32, #tpu.memory_space<vmem>>, %arg13: memref<1x64xf32, #tpu.memory_space<vmem>>, %arg14: memref<64x64xbf16, #tpu.memory_space<vmem>>, %arg15: memref<1x64xf32, #tpu.memory_space<vmem>>, %arg16: memref<1x64xf32, #tpu.memory_space<vmem>>, %arg17: memref<1x64xf32, #tpu.memory_space<vmem>>, %arg18: memref<64x2048xbf16, #tpu.memory_space<vmem>>, %arg19: memref<1x2048xf32, #tpu.memory_space<vmem>>, %arg20: memref<2048x64xbf16, #tpu.memory_space<vmem>>, %arg21: memref<1x64xf32, #tpu.memory_space<vmem>>, %arg22: memref<1x64xf32, #tpu.memory_space<vmem>>, %arg23: memref<1x64xf32, #tpu.memory_space<vmem>>, %arg24: memref<64x128xbf16, #tpu.memory_space<vmem>>, %arg25: memref<1x128xf32, #tpu.memory_space<vmem>>, %arg26: memref<8x128xf32, #tpu.memory_space<vmem>>) attributes {dimension_semantics = [#tpu.dimension_semantics<parallel>], iteration_bounds = array<i64: 1>, scalar_prefetch = 0 : i64, scratch_operands = 0 : i64, tpu.core_type = #tpu.core_type<tc>, window_params = [{transform_indices = @transform_0, window_bounds = array<i64: 8, 16>}, {pipeline_mode = #tpu.pipeline_mode<synchronous>, transform_indices = @transform_1, window_bounds = array<i64: 16, 64>}, {pipeline_mode = #tpu.pipeline_mode<synchronous>, transform_indices = @transform_2, window_bounds = array<i64: 1, 64>}, {pipeline_mode = #tpu.pipeline_mode<synchronous>, transform_indices = @transform_3, window_bounds = array<i64: 64, 64>}, {pipeline_mode = #tpu.pipeline_mode<synchronous>, transform_indices = @transform_4, window_bounds = array<i64: 1, 64>}, {pipeline_mode = #tpu.pipeline_mode<synchronous>, transform_indices = @transform_5, window_bounds = array<i64: 1, 64>}, {pipeline_mode = #tpu.pipeline_mode<synchronous>, transform_indices = @transform_6, window_bounds = array<i64: 1, 64>}, {pipeline_mode = #tpu.pipeline_mode<synchronous>, transform_indices = @transform_7, window_bounds = array<i64: 64, 2048>}, {pipeline_mode = #tpu.pipeline_mode<synchronous>, transform_indices = @transform_8, window_bounds = array<i64: 1, 2048>}, {pipeline_mode = #tpu.pipeline_mode<synchronous>, transform_indices = @transform_9, window_bounds = array<i64: 2048, 64>}, {pipeline_mode = #tpu.pipeline_mode<synchronous>, transform_indices = @transform_10, window_bounds = array<i64: 1, 64>}, {pipeline_mode = #tpu.pipeline_mode<synchronous>, transform_indices = @transform_11, window_bounds = array<i64: 1, 64>}, {pipeline_mode = #tpu.pipeline_mode<synchronous>, transform_indices = @transform_12, window_bounds = array<i64: 1, 64>}, {pipeline_mode = #tpu.pipeline_mode<synchronous>, transform_indices = @transform_13, window_bounds = array<i64: 64, 64>}, {pipeline_mode = #tpu.pipeline_mode<synchronous>, transform_indices = @transform_14, window_bounds = array<i64: 1, 64>}, {pipeline_mode = #tpu.pipeline_mode<synchronous>, transform_indices = @transform_15, window_bounds = array<i64: 1, 64>}, {pipeline_mode = #tpu.pipeline_mode<synchronous>, transform_indices = @transform_16, window_bounds = array<i64: 1, 64>}, {pipeline_mode = #tpu.pipeline_mode<synchronous>, transform_indices = @transform_17, window_bounds = array<i64: 64, 2048>}, {pipeline_mode = #tpu.pipeline_mode<synchronous>, transform_indices = @transform_18, window_bounds = array<i64: 1, 2048>}, {pipeline_mode = #tpu.pipeline_mode<synchronous>, transform_indices = @transform_19, window_bounds = array<i64: 2048, 64>}, {pipeline_mode = #tpu.pipeline_mode<synchronous>, transform_indices = @transform_20, window_bounds = array<i64: 1, 64>}, {pipeline_mode = #tpu.pipeline_mode<synchronous>, transform_indices = @transform_21, window_bounds = array<i64: 1, 64>}, {pipeline_mode = #tpu.pipeline_mode<synchronous>, transform_indices = @transform_22, window_bounds = array<i64: 1, 64>}, {pipeline_mode = #tpu.pipeline_mode<synchronous>, transform_indices = @transform_23, window_bounds = array<i64: 64, 128>}, {pipeline_mode = #tpu.pipeline_mode<synchronous>, transform_indices = @transform_24, window_bounds = array<i64: 1, 128>}, {transform_indices = @transform_25, window_bounds = array<i64: 8, 128>}]} {
    %c0 = arith.constant 0 : index
    %c0_0 = arith.constant 0 : index
    %0 = vector.load %arg1[%c0, %c0_0] : memref<8x16xf32, #tpu.memory_space<vmem>>, vector<8x16xf32>
    %1 = arith.truncf %0 : vector<8x16xf32> to vector<8x16xbf16>
    %c0_1 = arith.constant 0 : index
    %c0_2 = arith.constant 0 : index
    %2 = vector.load %arg2[%c0_1, %c0_2] : memref<16x64xbf16, #tpu.memory_space<vmem>>, vector<16x64xbf16>
    %cst = arith.constant dense<0.000000e+00> : vector<8x64xf32>
    %3 = tpu.matmul %1, %2, %cst {dimension_numbers = #tpu.dot_dimension_numbers<[1], [0], [0], [1], [0, 0, 1, 1], [], []>} : vector<8x16xbf16>, vector<16x64xbf16>, vector<8x64xf32> -> vector<8x64xf32>
    %c0_3 = arith.constant 0 : index
    %c0_4 = arith.constant 0 : index
    %4 = vector.load %arg3[%c0_3, %c0_4] : memref<1x64xf32, #tpu.memory_space<vmem>>, vector<1x64xf32>
    %5 = vector.broadcast %4 : vector<1x64xf32> to vector<8x64xf32>
    %6 = arith.addf %3, %5 : vector<8x64xf32>
    %7 = arith.truncf %6 : vector<8x64xf32> to vector<8x64xbf16>
    %c0_5 = arith.constant 0 : index
    %c0_6 = arith.constant 0 : index
    %8 = vector.load %arg4[%c0_5, %c0_6] : memref<64x64xbf16, #tpu.memory_space<vmem>>, vector<64x64xbf16>
    %cst_7 = arith.constant dense<0.000000e+00> : vector<8x64xf32>
    %9 = tpu.matmul %7, %8, %cst_7 {dimension_numbers = #tpu.dot_dimension_numbers<[1], [0], [0], [1], [0, 0, 1, 1], [], []>} : vector<8x64xbf16>, vector<64x64xbf16>, vector<8x64xf32> -> vector<8x64xf32>
    %c0_8 = arith.constant 0 : index
    %c0_9 = arith.constant 0 : index
    %10 = vector.load %arg5[%c0_8, %c0_9] : memref<1x64xf32, #tpu.memory_space<vmem>>, vector<1x64xf32>
    %11 = vector.broadcast %10 : vector<1x64xf32> to vector<8x64xf32>
    %12 = arith.addf %9, %11 : vector<8x64xf32>
    %cst_10 = arith.constant dense<0.000000e+00> : vector<8xf32>
    %13 = vector.multi_reduction <add>, %12, %cst_10 [1] : vector<8x64xf32> to vector<8xf32>
    %14 = vector.shape_cast %13 : vector<8xf32> to vector<8x1xf32>
    %cst_11 = arith.constant 6.400000e+01 : f32
    %15 = vector.broadcast %cst_11 : f32 to vector<8x1xf32>
    %16 = arith.divf %14, %15 : vector<8x1xf32>
    %17 = vector.broadcast %16 : vector<8x1xf32> to vector<8x64xf32>
    %18 = arith.subf %12, %17 : vector<8x64xf32>
    %19 = arith.mulf %18, %18 : vector<8x64xf32>
    %cst_12 = arith.constant dense<0.000000e+00> : vector<8xf32>
    %20 = vector.multi_reduction <add>, %19, %cst_12 [1] : vector<8x64xf32> to vector<8xf32>
    %21 = vector.shape_cast %20 : vector<8xf32> to vector<8x1xf32>
    %cst_13 = arith.constant 6.400000e+01 : f32
    %22 = vector.broadcast %cst_13 : f32 to vector<8x1xf32>
    %23 = arith.divf %21, %22 : vector<8x1xf32>
    %cst_14 = arith.constant 9.99999974E-6 : f32
    %24 = vector.broadcast %cst_14 : f32 to vector<8x1xf32>
    %25 = arith.addf %23, %24 : vector<8x1xf32>
    %26 = math.rsqrt %25 : vector<8x1xf32>
    %27 = vector.broadcast %26 : vector<8x1xf32> to vector<8x64xf32>
    %28 = arith.mulf %18, %27 : vector<8x64xf32>
    %c0_15 = arith.constant 0 : index
    %c0_16 = arith.constant 0 : index
    %29 = vector.load %arg6[%c0_15, %c0_16] : memref<1x64xf32, #tpu.memory_space<vmem>>, vector<1x64xf32>
    %30 = vector.broadcast %29 : vector<1x64xf32> to vector<8x64xf32>
    %31 = arith.mulf %28, %30 : vector<8x64xf32>
    %c0_17 = arith.constant 0 : index
    %c0_18 = arith.constant 0 : index
    %32 = vector.load %arg7[%c0_17, %c0_18] : memref<1x64xf32, #tpu.memory_space<vmem>>, vector<1x64xf32>
    %33 = vector.broadcast %32 : vector<1x64xf32> to vector<8x64xf32>
    %34 = arith.addf %31, %33 : vector<8x64xf32>
    %35 = arith.truncf %34 : vector<8x64xf32> to vector<8x64xbf16>
    %c0_19 = arith.constant 0 : index
    %c0_20 = arith.constant 0 : index
    %36 = vector.load %arg8[%c0_19, %c0_20] : memref<64x2048xbf16, #tpu.memory_space<vmem>>, vector<64x2048xbf16>
    %cst_21 = arith.constant dense<0.000000e+00> : vector<8x2048xf32>
    %37 = tpu.matmul %35, %36, %cst_21 {dimension_numbers = #tpu.dot_dimension_numbers<[1], [0], [0], [1], [0, 0, 1, 1], [], []>} : vector<8x64xbf16>, vector<64x2048xbf16>, vector<8x2048xf32> -> vector<8x2048xf32>
    %c0_22 = arith.constant 0 : index
    %c0_23 = arith.constant 0 : index
    %38 = vector.load %arg9[%c0_22, %c0_23] : memref<1x2048xf32, #tpu.memory_space<vmem>>, vector<1x2048xf32>
    %39 = vector.broadcast %38 : vector<1x2048xf32> to vector<8x2048xf32>
    %40 = arith.addf %37, %39 : vector<8x2048xf32>
    %cst_24 = arith.constant 0.000000e+00 : f32
    %41 = vector.broadcast %cst_24 : f32 to vector<8x2048xf32>
    %42 = arith.maximumf %40, %41 : vector<8x2048xf32>
    %43 = arith.truncf %42 : vector<8x2048xf32> to vector<8x2048xbf16>
    %c0_25 = arith.constant 0 : index
    %c0_26 = arith.constant 0 : index
    %44 = vector.load %arg10[%c0_25, %c0_26] : memref<2048x64xbf16, #tpu.memory_space<vmem>>, vector<2048x64xbf16>
    %cst_27 = arith.constant dense<0.000000e+00> : vector<8x64xf32>
    %45 = tpu.matmul %43, %44, %cst_27 {dimension_numbers = #tpu.dot_dimension_numbers<[1], [0], [0], [1], [0, 0, 1, 1], [], []>} : vector<8x2048xbf16>, vector<2048x64xbf16>, vector<8x64xf32> -> vector<8x64xf32>
    %c0_28 = arith.constant 0 : index
    %c0_29 = arith.constant 0 : index
    %46 = vector.load %arg11[%c0_28, %c0_29] : memref<1x64xf32, #tpu.memory_space<vmem>>, vector<1x64xf32>
    %47 = vector.broadcast %46 : vector<1x64xf32> to vector<8x64xf32>
    %48 = arith.addf %45, %47 : vector<8x64xf32>
    %49 = arith.addf %34, %48 : vector<8x64xf32>
    %cst_30 = arith.constant dense<0.000000e+00> : vector<8xf32>
    %50 = vector.multi_reduction <add>, %49, %cst_30 [1] : vector<8x64xf32> to vector<8xf32>
    %51 = vector.shape_cast %50 : vector<8xf32> to vector<8x1xf32>
    %cst_31 = arith.constant 6.400000e+01 : f32
    %52 = vector.broadcast %cst_31 : f32 to vector<8x1xf32>
    %53 = arith.divf %51, %52 : vector<8x1xf32>
    %54 = vector.broadcast %53 : vector<8x1xf32> to vector<8x64xf32>
    %55 = arith.subf %49, %54 : vector<8x64xf32>
    %56 = arith.mulf %55, %55 : vector<8x64xf32>
    %cst_32 = arith.constant dense<0.000000e+00> : vector<8xf32>
    %57 = vector.multi_reduction <add>, %56, %cst_32 [1] : vector<8x64xf32> to vector<8xf32>
    %58 = vector.shape_cast %57 : vector<8xf32> to vector<8x1xf32>
    %cst_33 = arith.constant 6.400000e+01 : f32
    %59 = vector.broadcast %cst_33 : f32 to vector<8x1xf32>
    %60 = arith.divf %58, %59 : vector<8x1xf32>
    %cst_34 = arith.constant 9.99999974E-6 : f32
    %61 = vector.broadcast %cst_34 : f32 to vector<8x1xf32>
    %62 = arith.addf %60, %61 : vector<8x1xf32>
    %63 = math.rsqrt %62 : vector<8x1xf32>
    %64 = vector.broadcast %63 : vector<8x1xf32> to vector<8x64xf32>
    %65 = arith.mulf %55, %64 : vector<8x64xf32>
    %c0_35 = arith.constant 0 : index
    %c0_36 = arith.constant 0 : index
    %66 = vector.load %arg12[%c0_35, %c0_36] : memref<1x64xf32, #tpu.memory_space<vmem>>, vector<1x64xf32>
    %67 = vector.broadcast %66 : vector<1x64xf32> to vector<8x64xf32>
    %68 = arith.mulf %65, %67 : vector<8x64xf32>
    %c0_37 = arith.constant 0 : index
    %c0_38 = arith.constant 0 : index
    %69 = vector.load %arg13[%c0_37, %c0_38] : memref<1x64xf32, #tpu.memory_space<vmem>>, vector<1x64xf32>
    %70 = vector.broadcast %69 : vector<1x64xf32> to vector<8x64xf32>
    %71 = arith.addf %68, %70 : vector<8x64xf32>
    %72 = arith.truncf %71 : vector<8x64xf32> to vector<8x64xbf16>
    %c0_39 = arith.constant 0 : index
    %c0_40 = arith.constant 0 : index
    %73 = vector.load %arg14[%c0_39, %c0_40] : memref<64x64xbf16, #tpu.memory_space<vmem>>, vector<64x64xbf16>
    %cst_41 = arith.constant dense<0.000000e+00> : vector<8x64xf32>
    %74 = tpu.matmul %72, %73, %cst_41 {dimension_numbers = #tpu.dot_dimension_numbers<[1], [0], [0], [1], [0, 0, 1, 1], [], []>} : vector<8x64xbf16>, vector<64x64xbf16>, vector<8x64xf32> -> vector<8x64xf32>
    %c0_42 = arith.constant 0 : index
    %c0_43 = arith.constant 0 : index
    %75 = vector.load %arg15[%c0_42, %c0_43] : memref<1x64xf32, #tpu.memory_space<vmem>>, vector<1x64xf32>
    %76 = vector.broadcast %75 : vector<1x64xf32> to vector<8x64xf32>
    %77 = arith.addf %74, %76 : vector<8x64xf32>
    %cst_44 = arith.constant dense<0.000000e+00> : vector<8xf32>
    %78 = vector.multi_reduction <add>, %77, %cst_44 [1] : vector<8x64xf32> to vector<8xf32>
    %79 = vector.shape_cast %78 : vector<8xf32> to vector<8x1xf32>
    %cst_45 = arith.constant 6.400000e+01 : f32
    %80 = vector.broadcast %cst_45 : f32 to vector<8x1xf32>
    %81 = arith.divf %79, %80 : vector<8x1xf32>
    %82 = vector.broadcast %81 : vector<8x1xf32> to vector<8x64xf32>
    %83 = arith.subf %77, %82 : vector<8x64xf32>
    %84 = arith.mulf %83, %83 : vector<8x64xf32>
    %cst_46 = arith.constant dense<0.000000e+00> : vector<8xf32>
    %85 = vector.multi_reduction <add>, %84, %cst_46 [1] : vector<8x64xf32> to vector<8xf32>
    %86 = vector.shape_cast %85 : vector<8xf32> to vector<8x1xf32>
    %cst_47 = arith.constant 6.400000e+01 : f32
    %87 = vector.broadcast %cst_47 : f32 to vector<8x1xf32>
    %88 = arith.divf %86, %87 : vector<8x1xf32>
    %cst_48 = arith.constant 9.99999974E-6 : f32
    %89 = vector.broadcast %cst_48 : f32 to vector<8x1xf32>
    %90 = arith.addf %88, %89 : vector<8x1xf32>
    %91 = math.rsqrt %90 : vector<8x1xf32>
    %92 = vector.broadcast %91 : vector<8x1xf32> to vector<8x64xf32>
    %93 = arith.mulf %83, %92 : vector<8x64xf32>
    %c0_49 = arith.constant 0 : index
    %c0_50 = arith.constant 0 : index
    %94 = vector.load %arg16[%c0_49, %c0_50] : memref<1x64xf32, #tpu.memory_space<vmem>>, vector<1x64xf32>
    %95 = vector.broadcast %94 : vector<1x64xf32> to vector<8x64xf32>
    %96 = arith.mulf %93, %95 : vector<8x64xf32>
    %c0_51 = arith.constant 0 : index
    %c0_52 = arith.constant 0 : index
    %97 = vector.load %arg17[%c0_51, %c0_52] : memref<1x64xf32, #tpu.memory_space<vmem>>, vector<1x64xf32>
    %98 = vector.broadcast %97 : vector<1x64xf32> to vector<8x64xf32>
    %99 = arith.addf %96, %98 : vector<8x64xf32>
    %100 = arith.truncf %99 : vector<8x64xf32> to vector<8x64xbf16>
    %c0_53 = arith.constant 0 : index
    %c0_54 = arith.constant 0 : index
    %101 = vector.load %arg18[%c0_53, %c0_54] : memref<64x2048xbf16, #tpu.memory_space<vmem>>, vector<64x2048xbf16>
    %cst_55 = arith.constant dense<0.000000e+00> : vector<8x2048xf32>
    %102 = tpu.matmul %100, %101, %cst_55 {dimension_numbers = #tpu.dot_dimension_numbers<[1], [0], [0], [1], [0, 0, 1, 1], [], []>} : vector<8x64xbf16>, vector<64x2048xbf16>, vector<8x2048xf32> -> vector<8x2048xf32>
    %c0_56 = arith.constant 0 : index
    %c0_57 = arith.constant 0 : index
    %103 = vector.load %arg19[%c0_56, %c0_57] : memref<1x2048xf32, #tpu.memory_space<vmem>>, vector<1x2048xf32>
    %104 = vector.broadcast %103 : vector<1x2048xf32> to vector<8x2048xf32>
    %105 = arith.addf %102, %104 : vector<8x2048xf32>
    %cst_58 = arith.constant 0.000000e+00 : f32
    %106 = vector.broadcast %cst_58 : f32 to vector<8x2048xf32>
    %107 = arith.maximumf %105, %106 : vector<8x2048xf32>
    %108 = arith.truncf %107 : vector<8x2048xf32> to vector<8x2048xbf16>
    %c0_59 = arith.constant 0 : index
    %c0_60 = arith.constant 0 : index
    %109 = vector.load %arg20[%c0_59, %c0_60] : memref<2048x64xbf16, #tpu.memory_space<vmem>>, vector<2048x64xbf16>
    %cst_61 = arith.constant dense<0.000000e+00> : vector<8x64xf32>
    %110 = tpu.matmul %108, %109, %cst_61 {dimension_numbers = #tpu.dot_dimension_numbers<[1], [0], [0], [1], [0, 0, 1, 1], [], []>} : vector<8x2048xbf16>, vector<2048x64xbf16>, vector<8x64xf32> -> vector<8x64xf32>
    %c0_62 = arith.constant 0 : index
    %c0_63 = arith.constant 0 : index
    %111 = vector.load %arg21[%c0_62, %c0_63] : memref<1x64xf32, #tpu.memory_space<vmem>>, vector<1x64xf32>
    %112 = vector.broadcast %111 : vector<1x64xf32> to vector<8x64xf32>
    %113 = arith.addf %110, %112 : vector<8x64xf32>
    %114 = arith.addf %99, %113 : vector<8x64xf32>
    %cst_64 = arith.constant dense<0.000000e+00> : vector<8xf32>
    %115 = vector.multi_reduction <add>, %114, %cst_64 [1] : vector<8x64xf32> to vector<8xf32>
    %116 = vector.shape_cast %115 : vector<8xf32> to vector<8x1xf32>
    %cst_65 = arith.constant 6.400000e+01 : f32
    %117 = vector.broadcast %cst_65 : f32 to vector<8x1xf32>
    %118 = arith.divf %116, %117 : vector<8x1xf32>
    %119 = vector.broadcast %118 : vector<8x1xf32> to vector<8x64xf32>
    %120 = arith.subf %114, %119 : vector<8x64xf32>
    %121 = arith.mulf %120, %120 : vector<8x64xf32>
    %cst_66 = arith.constant dense<0.000000e+00> : vector<8xf32>
    %122 = vector.multi_reduction <add>, %121, %cst_66 [1] : vector<8x64xf32> to vector<8xf32>
    %123 = vector.shape_cast %122 : vector<8xf32> to vector<8x1xf32>
    %cst_67 = arith.constant 6.400000e+01 : f32
    %124 = vector.broadcast %cst_67 : f32 to vector<8x1xf32>
    %125 = arith.divf %123, %124 : vector<8x1xf32>
    %cst_68 = arith.constant 9.99999974E-6 : f32
    %126 = vector.broadcast %cst_68 : f32 to vector<8x1xf32>
    %127 = arith.addf %125, %126 : vector<8x1xf32>
    %128 = math.rsqrt %127 : vector<8x1xf32>
    %129 = vector.broadcast %128 : vector<8x1xf32> to vector<8x64xf32>
    %130 = arith.mulf %120, %129 : vector<8x64xf32>
    %c0_69 = arith.constant 0 : index
    %c0_70 = arith.constant 0 : index
    %131 = vector.load %arg22[%c0_69, %c0_70] : memref<1x64xf32, #tpu.memory_space<vmem>>, vector<1x64xf32>
    %132 = vector.broadcast %131 : vector<1x64xf32> to vector<8x64xf32>
    %133 = arith.mulf %130, %132 : vector<8x64xf32>
    %c0_71 = arith.constant 0 : index
    %c0_72 = arith.constant 0 : index
    %134 = vector.load %arg23[%c0_71, %c0_72] : memref<1x64xf32, #tpu.memory_space<vmem>>, vector<1x64xf32>
    %135 = vector.broadcast %134 : vector<1x64xf32> to vector<8x64xf32>
    %136 = arith.addf %133, %135 : vector<8x64xf32>
    %137 = arith.truncf %136 : vector<8x64xf32> to vector<8x64xbf16>
    %c0_73 = arith.constant 0 : index
    %c0_74 = arith.constant 0 : index
    %138 = vector.load %arg24[%c0_73, %c0_74] : memref<64x128xbf16, #tpu.memory_space<vmem>>, vector<64x128xbf16>
    %cst_75 = arith.constant dense<0.000000e+00> : vector<8x128xf32>
    %139 = tpu.matmul %137, %138, %cst_75 {dimension_numbers = #tpu.dot_dimension_numbers<[1], [0], [0], [1], [0, 0, 1, 1], [], []>} : vector<8x64xbf16>, vector<64x128xbf16>, vector<8x128xf32> -> vector<8x128xf32>
    %c0_76 = arith.constant 0 : index
    %c0_77 = arith.constant 0 : index
    %140 = vector.load %arg25[%c0_76, %c0_77] : memref<1x128xf32, #tpu.memory_space<vmem>>, vector<1x128xf32>
    %141 = vector.broadcast %140 : vector<1x128xf32> to vector<8x128xf32>
    %142 = arith.addf %139, %141 : vector<8x128xf32>
    %c0_78 = arith.constant 0 : index
    %c0_79 = arith.constant 0 : index
    %143 = vector.load %arg26[%c0_78, %c0_79] : memref<8x128xf32, #tpu.memory_space<vmem>>, vector<8x128xf32>
    tpu.vector_store %arg26[%c0_78, %c0_79], %142 {strides = array<i32>} : memref<8x128xf32, #tpu.memory_space<vmem>>, vector<8x128xf32>,
    return
  }
  func.func @transform_0(%arg0: i32) -> (i32, i32) {
    %c0_i32 = arith.constant 0 : i32
    %c0_i32_0 = arith.constant 0 : i32
    return %arg0, %c0_i32 : i32, i32
  }
  func.func @transform_1(%arg0: i32) -> (i32, i32) {
    %c0_i32 = arith.constant 0 : i32
    %c0_i32_0 = arith.constant 0 : i32
    %c0_i32_1 = arith.constant 0 : i32
    return %c0_i32, %c0_i32_0 : i32, i32
  }
  func.func @transform_2(%arg0: i32) -> (i32, i32) {
    %c0_i32 = arith.constant 0 : i32
    %c0_i32_0 = arith.constant 0 : i32
    %c0_i32_1 = arith.constant 0 : i32
    return %c0_i32, %c0_i32_0 : i32, i32
  }
  func.func @transform_3(%arg0: i32) -> (i32, i32) {
    %c0_i32 = arith.constant 0 : i32
    %c0_i32_0 = arith.constant 0 : i32
    %c0_i32_1 = arith.constant 0 : i32
    return %c0_i32, %c0_i32_0 : i32, i32
  }
  func.func @transform_4(%arg0: i32) -> (i32, i32) {
    %c0_i32 = arith.constant 0 : i32
    %c0_i32_0 = arith.constant 0 : i32
    %c0_i32_1 = arith.constant 0 : i32
    return %c0_i32, %c0_i32_0 : i32, i32
  }
  func.func @transform_5(%arg0: i32) -> (i32, i32) {
    %c0_i32 = arith.constant 0 : i32
    %c0_i32_0 = arith.constant 0 : i32
    %c0_i32_1 = arith.constant 0 : i32
    return %c0_i32, %c0_i32_0 : i32, i32
  }
  func.func @transform_6(%arg0: i32) -> (i32, i32) {
    %c0_i32 = arith.constant 0 : i32
    %c0_i32_0 = arith.constant 0 : i32
    %c0_i32_1 = arith.constant 0 : i32
    return %c0_i32, %c0_i32_0 : i32, i32
  }
  func.func @transform_7(%arg0: i32) -> (i32, i32) {
    %c0_i32 = arith.constant 0 : i32
    %c0_i32_0 = arith.constant 0 : i32
    %c0_i32_1 = arith.constant 0 : i32
    return %c0_i32, %c0_i32_0 : i32, i32
  }
  func.func @transform_8(%arg0: i32) -> (i32, i32) {
    %c0_i32 = arith.constant 0 : i32
    %c0_i32_0 = arith.constant 0 : i32
    %c0_i32_1 = arith.constant 0 : i32
    return %c0_i32, %c0_i32_0 : i32, i32
  }
  func.func @transform_9(%arg0: i32) -> (i32, i32) {
    %c0_i32 = arith.constant 0 : i32
    %c0_i32_0 = arith.constant 0 : i32
    %c0_i32_1 = arith.constant 0 : i32
    return %c0_i32, %c0_i32_0 : i32, i32
  }
  func.func @transform_10(%arg0: i32) -> (i32, i32) {
    %c0_i32 = arith.constant 0 : i32
    %c0_i32_0 = arith.constant 0 : i32
    %c0_i32_1 = arith.constant 0 : i32
    return %c0_i32, %c0_i32_0 : i32, i32
  }
  func.func @transform_11(%arg0: i32) -> (i32, i32) {
    %c0_i32 = arith.constant 0 : i32
    %c0_i32_0 = arith.constant 0 : i32
    %c0_i32_1 = arith.constant 0 : i32
    return %c0_i32, %c0_i32_0 : i32, i32
  }
  func.func @transform_12(%arg0: i32) -> (i32, i32) {
    %c0_i32 = arith.constant 0 : i32
    %c0_i32_0 = arith.constant 0 : i32
    %c0_i32_1 = arith.constant 0 : i32
    return %c0_i32, %c0_i32_0 : i32, i32
  }
  func.func @transform_13(%arg0: i32) -> (i32, i32) {
    %c0_i32 = arith.constant 0 : i32
    %c0_i32_0 = arith.constant 0 : i32
    %c0_i32_1 = arith.constant 0 : i32
    return %c0_i32, %c0_i32_0 : i32, i32
  }
  func.func @transform_14(%arg0: i32) -> (i32, i32) {
    %c0_i32 = arith.constant 0 : i32
    %c0_i32_0 = arith.constant 0 : i32
    %c0_i32_1 = arith.constant 0 : i32
    return %c0_i32, %c0_i32_0 : i32, i32
  }
  func.func @transform_15(%arg0: i32) -> (i32, i32) {
    %c0_i32 = arith.constant 0 : i32
    %c0_i32_0 = arith.constant 0 : i32
    %c0_i32_1 = arith.constant 0 : i32
    return %c0_i32, %c0_i32_0 : i32, i32
  }
  func.func @transform_16(%arg0: i32) -> (i32, i32) {
    %c0_i32 = arith.constant 0 : i32
    %c0_i32_0 = arith.constant 0 : i32
    %c0_i32_1 = arith.constant 0 : i32
    return %c0_i32, %c0_i32_0 : i32, i32
  }
  func.func @transform_17(%arg0: i32) -> (i32, i32) {
    %c0_i32 = arith.constant 0 : i32
    %c0_i32_0 = arith.constant 0 : i32
    %c0_i32_1 = arith.constant 0 : i32
    return %c0_i32, %c0_i32_0 : i32, i32
  }
  func.func @transform_18(%arg0: i32) -> (i32, i32) {
    %c0_i32 = arith.constant 0 : i32
    %c0_i32_0 = arith.constant 0 : i32
    %c0_i32_1 = arith.constant 0 : i32
    return %c0_i32, %c0_i32_0 : i32, i32
  }
  func.func @transform_19(%arg0: i32) -> (i32, i32) {
    %c0_i32 = arith.constant 0 : i32
    %c0_i32_0 = arith.constant 0 : i32
    %c0_i32_1 = arith.constant 0 : i32
    return %c0_i32, %c0_i32_0 : i32, i32
  }
  func.func @transform_20(%arg0: i32) -> (i32, i32) {
    %c0_i32 = arith.constant 0 : i32
    %c0_i32_0 = arith.constant 0 : i32
    %c0_i32_1 = arith.constant 0 : i32
    return %c0_i32, %c0_i32_0 : i32, i32
  }
  func.func @transform_21(%arg0: i32) -> (i32, i32) {
    %c0_i32 = arith.constant 0 : i32
    %c0_i32_0 = arith.constant 0 : i32
    %c0_i32_1 = arith.constant 0 : i32
    return %c0_i32, %c0_i32_0 : i32, i32
  }
  func.func @transform_22(%arg0: i32) -> (i32, i32) {
    %c0_i32 = arith.constant 0 : i32
    %c0_i32_0 = arith.constant 0 : i32
    %c0_i32_1 = arith.constant 0 : i32
    return %c0_i32, %c0_i32_0 : i32, i32
  }
  func.func @transform_23(%arg0: i32) -> (i32, i32) {
    %c0_i32 = arith.constant 0 : i32
    %c0_i32_0 = arith.constant 0 : i32
    %c0_i32_1 = arith.constant 0 : i32
    return %c0_i32, %c0_i32_0 : i32, i32
  }
  func.func @transform_24(%arg0: i32) -> (i32, i32) {
    %c0_i32 = arith.constant 0 : i32
    %c0_i32_0 = arith.constant 0 : i32
    %c0_i32_1 = arith.constant 0 : i32
    return %c0_i32, %c0_i32_0 : i32, i32
  }
  func.func @transform_25(%arg0: i32) -> (i32, i32) {
    %c0_i32 = arith.constant 0 : i32
    %c0_i32_0 = arith.constant 0 : i32
    return %arg0, %c0_i32 : i32, i32
  }
}

</mosaic_0001>

<bundles_post_ra>
// kernel: bayesian_transformer_forward.1
= control target key start
LH: loop header
LB: loop body
LE: loop exit
PB: predicated region body
PF: predicated region fallthrough
CT: control target
= control target key end

     0   :  { %vm95_vm0 = vcmask 130048   ;;  %vm149_vm1 = vcmask 523264   ;;  %v6260_v17 = vmov 64.0   ;;  %s8175_s1 = inlined_call_operand.vmem [shape: bf16[16,64], index: 1, kind: input, shape index: {}]   ;;  %s8176_s0 = inlined_call_operand.vmem [shape: f32[8,16], index: 0, kind: input, shape index: {}]   ;;  %s8177_s3 = inlined_call_operand.vmem [shape: bf16[64,64], index: 3, kind: input, shape index: {}]   ;;  %s8178_s2 = inlined_call_operand.vmem [shape: f32[1,64], index: 2, kind: input, shape index: {}]   ;;  %s8179_s4 = inlined_call_operand.vmem [shape: f32[1,64], index: 4, kind: input, shape index: {}]   ;;  %s8180_s5 = inlined_call_operand.vmem [shape: f32[1,64], index: 5, kind: input, shape index: {}]   ;;  %s8181_s6 = inlined_call_operand.vmem [shape: f32[1,64], index: 6, kind: input, shape index: {}]   ;;  %s8182_s7 = inlined_call_operand.vmem [shape: bf16[64,2048], index: 7, kind: input, shape index: {}]   ;;  %s8183_s9 = inlined_call_operand.vmem [shape: bf16[2048,64], index: 9, kind: input, shape index: {}]   ;;  %s8184_s8 = inlined_call_operand.vmem [shape: f32[1,2048], index: 8, kind: input, shape index: {}]   ;;  %s8185_s10 = inlined_call_operand.vmem [shape: f32[1,64], index: 10, kind: input, shape index: {}]   ;;  %s8186_s11 = inlined_call_operand.vmem [shape: f32[1,64], index: 11, kind: input, shape index: {}]   ;;  %s8187_s12 = inlined_call_operand.vmem [shape: f32[1,64], index: 12, kind: input, shape index: {}]   ;;  %s8188_s14 = inlined_call_operand.vmem [shape: f32[1,64], index: 14, kind: input, shape index: {}]   ;;  %s8189_s13 = inlined_call_operand.vmem [shape: bf16[64,64], index: 13, kind: input, shape index: {}]   ;;  %s8190_s15 = inlined_call_operand.vmem [shape: f32[1,64], index: 15, kind: input, shape index: {}]   ;;  %s8191_s16 = inlined_call_operand.vmem [shape: f32[1,64], index: 16, kind: input, shape index: {}]   ;;  %s8192_s17 = inlined_call_operand.vmem [shape: bf16[64,2048], index: 17, kind: input, shape index: {}]   ;;  %s8193_s19 = inlined_call_operand.vmem [shape: bf16[2048,64], index: 19, kind: input, shape index: {}]   ;;  %s8194_s18 = inlined_call_operand.vmem [shape: f32[1,2048], index: 18, kind: input, shape index: {}]   ;;  %s8195_s20 = inlined_call_operand.vmem [shape: f32[1,64], index: 20, kind: input, shape index: {}]   ;;  %s8196_s21 = inlined_call_operand.vmem [shape: f32[1,64], index: 21, kind: input, shape index: {}]   ;;  %s8197_s22 = inlined_call_operand.vmem [shape: f32[1,64], index: 22, kind: input, shape index: {}]   ;;  %s8198_s24 = inlined_call_operand.vmem [shape: f32[1,128], index: 24, kind: input, shape index: {}]   ;;  %s8199_s23 = inlined_call_operand.vmem [shape: bf16[64,128], index: 23, kind: input, shape index: {}]   ;;  %s8200_s25 = inlined_call_operand.vmem [shape: f32[8,128], index: 25, kind: output, shape index: {}]  }
   0x1   :  { %8205 = sst [smem:[#allocation2_spill]] %s8175_s1  ;;  %6250 = vrcp.f32 %v6260_v17 }
   0x2   :  { %8206 = sst [smem:[#allocation3_spill]] %s8176_s0 }
   0x3   :  { %8207 = sst [smem:[#allocation4_spill]] %s8177_s3 }
   0x4   :  { %8208 = sst [smem:[#allocation5_spill]] %s8178_s2 }
   0x5   :  { %8209 = sst [smem:[#allocation6_spill]] %s8179_s4 }
   0x6   :  { %8210 = sst [smem:[#allocation7_spill]] %s8180_s5 }
   0x7   :  { %8211 = sst [smem:[#allocation8_spill]] %s8181_s6  ;;  %v6251_v18 = vpop.eup %6250 }
   0x8   :  { %8212 = sst [smem:[#allocation9_spill]] %s8182_s7  ;;  %v170_v19 = vmul.f32 64.0, %v6251_v18  ;;  %vm174_vm2 = vweird.f32 %v6251_v18 }
   0x9   :  { %8213 = sst [smem:[#allocation10_spill]] %s8183_s9 }
   0xa   :  { %8214 = sst [smem:[#allocation11_spill]] %s8184_s8  ;;  %v171_v20 = vsub.f32 1.0, %v170_v19 }
   0xb   :  { %8215 = sst [smem:[#allocation12_spill]] %s8195_s20 }
   0xc   :  { %s8216_s6 = sld [smem:[#allocation2_spill]]  ;;  %v172_v21 = vmul.f32 %v6251_v18, %v171_v20 }
   0xd   :  { %s8217_s20 = sld [smem:[#allocation3_spill]] }
   0xe   :  { %s8218_s0 = sld [smem:[#allocation4_spill]]  ;;  %v173_v22 = vadd.f32 %v6251_v18, %v172_v21 }
   0xf   :  { %s8219_s29 = sld [smem:[#allocation5_spill]] }
  0x10   :  { %s8220_s30 = sld [smem:[#allocation6_spill]]  ;;  %v6417_v23 = vsel %vm174_vm2, %v6251_v18, %v173_v22 }
  0x11   :  { %s8221_s26 = sld [smem:[#allocation9_spill]] }
  0x12   :  { %v5838_v0 = vld [vmem:[%s8216_s6] sm:$0xff]  ;;  %s8222_s1 = sld [smem:[#allocation7_spill]] }
  0x13   :  { %v81_v1 = vld [vmem:[%s8217_s20] sm:$0xff]  ;;  %106 = vmatpush.bf16.msra.mxu0 %v5838_v0  ;;  %s8223_s6 = sld [smem:[#allocation8_spill]] }
  0x14   :  { %v5842_v2 = vld [vmem:[%s8218_s0 + $0x18] sm:$0xff]  ;;  %v82_v3 = vpack.c.bf16 %v81_v1, %v81_v1  ;;  %v5841_v4 = vld [vmem:[%s8218_s0 + $0x10] sm:$0xff]  ;;  %v5840_v5 = vld [vmem:[%s8218_s0 + $0x8] sm:$0xff]  ;;  %s8224_s5 = sld [smem:[#allocation10_spill]] }
  0x15   :  { %157 = vmatpush.bf16.msra.mxu1 %v5842_v2  ;;  %v5839_v6 = vld [vmem:[%s8218_s0] sm:$0xff]  ;;  %s8225_s0 = sld [smem:[#allocation11_spill]] }
  0x16   :  { %4218 = vmatmul.msk.bf16.vlgmr.msra.gmra.mxu0 %vm95_vm0, %v82_v3  ;;  %v6236_v7 = vld [vmem:[%s8219_s29] ss:$0 sm:$0xff] }
  0x17   :  { %v6237_v12 = vld [vmem:[%s8220_s30] ss:$0 sm:$0xff]  ;;  %v5891_v31 = vld [vmem:[%s8221_s26 + $0x184] sm:$0xf]  ;;  %v4438_v34 = vld [vmem:[%s8221_s26 + $0x188] sm:$0xf] }
  0x18   :  { %v4430_v29 = vld [vmem:[%s8221_s26 + $0x180] sm:$0xf]  ;;  %v4432_v33 = vld [vmem:[%s8221_s26 + $0x1c0] sm:$0xf0]  ;;  %v5900_v35 = vld [vmem:[%s8221_s26 + $0x1c4] sm:$0xf0] }
  0x19   :  { %158 = vmatpush.bf16.msra.mxu1 %v5841_v4  ;;  %v5899_v30 = vld [vmem:[%s8221_s26 + $0x1bc] sm:$0xf0]  ;;  %v4435_v36 = vor.u32 %v5891_v31, %v4432_v33  ;;  %v4439_v37 = vor.u32 %v5900_v35, %v4438_v34  ;;  %v5892_v38 = vld [vmem:[%s8221_s26 + $0x18c] sm:$0xf]  ;;  %v5875_v43 = vld [vmem:[%s8221_s26 + $0x104] sm:$0xf] }
  0x1a   :  { %v4431_v32 = vor.u32 %v5899_v30, %v4430_v29  ;;  %v4440_v39 = vld [vmem:[%s8221_s26 + $0x1c8] sm:$0xf0]  ;;  %v4366_v41 = vld [vmem:[%s8221_s26 + $0x100] sm:$0xf]  ;;  %v4368_v45 = vld [vmem:[%s8221_s26 + $0x140] sm:$0xf0] }
  0x1b   :  { %v4443_v40 = vor.u32 %v5892_v38, %v4440_v39  ;;  %646 = vmatpush.bf16.msra.mxu3 %v4435_v36  ;;  %659 = vmatpush.bf16.msrb.mxu0 %v4439_v37  ;;  %v5883_v42 = vld [vmem:[%s8221_s26 + $0x13c] sm:$0xf0]  ;;  %v4374_v46 = vld [vmem:[%s8221_s26 + $0x108] sm:$0xf]  ;;  %v4371_v48 = vor.u32 %v5875_v43, %v4368_v45  ;;  %v5876_v50 = vld [vmem:[%s8221_s26 + $0x10c] sm:$0xf] }
  0x1c   :  { %633 = vmatpush.bf16.msra.mxu2 %v4431_v32  ;;  %v4367_v44 = vor.u32 %v5883_v42, %v4366_v41  ;;  %v5884_v47 = vld [vmem:[%s8221_s26 + $0x144] sm:$0xf0]  ;;  %v4376_v51 = vld [vmem:[%s8221_s26 + $0x148] sm:$0xf0]  ;;  %v4302_v53 = vld [vmem:[%s8221_s26 + $0x80] sm:$0xf] }
  0x1d   :  { %159 = vmatpush.bf16.msra.mxu1 %v5840_v5  ;;  %v4375_v49 = vor.u32 %v5884_v47, %v4374_v46  ;;  %v4379_v52 = vor.u32 %v5876_v50, %v4376_v51  ;;  %v5867_v54 = vld [vmem:[%s8221_s26 + $0xbc] sm:$0xf0]  ;;  %v5859_v55 = vld [vmem:[%s8221_s26 + $0x84] sm:$0xf]  ;;  %v4310_v58 = vld [vmem:[%s8221_s26 + $0x88] sm:$0xf] }
  0x1e   :  { %v4303_v56 = vor.u32 %v5867_v54, %v4302_v53  ;;  %v4304_v57 = vld [vmem:[%s8221_s26 + $0xc0] sm:$0xf0]  ;;  %v5868_v59 = vld [vmem:[%s8221_s26 + $0xc4] sm:$0xf0]  ;;  %v5860_v62 = vld [vmem:[%s8221_s26 + $0x8c] sm:$0xf] }
  0x1f   :  { %647 = vmatpush.bf16.msra.mxu3 %v4371_v48  ;;  %660 = vmatpush.bf16.msrb.mxu0 %v4375_v49  ;;  %v4307_v60 = vor.u32 %v5859_v55, %v4304_v57  ;;  %v4311_v61 = vor.u32 %v5868_v59, %v4310_v58  ;;  %v4312_v63 = vld [vmem:[%s8221_s26 + $0xc8] sm:$0xf0]  ;;  %v4238_v1 = vld [vmem:[%s8221_s26] sm:$0xf]  ;;  %v5843_v3 = vld [vmem:[%s8221_s26 + $0x4] sm:$0xf] }
  0x20   :  { %634 = vmatpush.bf16.msra.mxu2 %v4367_v44  ;;  %v4315_v0 = vor.u32 %v5860_v62, %v4312_v63  ;;  %v5851_v2 = vld [vmem:[%s8221_s26 + $0x3c] sm:$0xf0]  ;;  %v4240_v5 = vld [vmem:[%s8221_s26 + $0x40] sm:$0xf0]  ;;  %v4448_v17 = vld [vmem:[%s8221_s26 + $0x1d0] sm:$0xf0] }
  0x21   :  { %160 = vmatpush.bf16.msra.mxu1 %v5839_v6  ;;  %v4239_v4 = vor.u32 %v5851_v2, %v4238_v1  ;;  %v4246_v6 = vld [vmem:[%s8221_s26 + $0x8] sm:$0xf]  ;;  %v4454_v18 = vld [vmem:[%s8221_s26 + $0x198] sm:$0xf]  ;;  %v5885_v30 = vld [vmem:[%s8221_s26 + $0x14c] sm:$0xf0] }
  0x22   :  { %v5902_v19 = vld [vmem:[%s8221_s26 + $0x1d4] sm:$0xf0]  ;;  %v5877_v31 = vld [vmem:[%s8221_s26 + $0x114] sm:$0xf]  ;;  %v5878_v37 = vld [vmem:[%s8221_s26 + $0x11c] sm:$0xf] }
  0x23   :  { %648 = vmatpush.bf16.msra.mxu3 %v4307_v60  ;;  %661 = vmatpush.bf16.msrb.mxu0 %v4311_v61  ;;  %v4455_v22 = vor.u32 %v5902_v19, %v4454_v18  ;;  %v4384_v32 = vld [vmem:[%s8221_s26 + $0x150] sm:$0xf0]  ;;  %v4390_v35 = vld [vmem:[%s8221_s26 + $0x118] sm:$0xf]  ;;  %v4318_v41 = vld [vmem:[%s8221_s26 + $0x90] sm:$0xf] }
  0x24   :  { %635 = vmatpush.bf16.msra.mxu2 %v4303_v56  ;;  %v4387_v34 = vor.u32 %v5877_v31, %v4384_v32  ;;  %v5886_v36 = vld [vmem:[%s8221_s26 + $0x154] sm:$0xf0]  ;;  %v5869_v43 = vld [vmem:[%s8221_s26 + $0xcc] sm:$0xf0]  ;;  %v5861_v44 = vld [vmem:[%s8221_s26 + $0x94] sm:$0xf] }
  0x25   :  { %672 = vmatpush.bf16.msrb.mxu1 %v4443_v40  ;;  %v4391_v39 = vor.u32 %v5886_v36, %v4390_v35  ;;  %v4392_v40 = vld [vmem:[%s8221_s26 + $0x158] sm:$0xf0]  ;;  %v4320_v45 = vld [vmem:[%s8221_s26 + $0xd0] sm:$0xf0]  ;;  %v4319_v46 = vor.u32 %v5869_v43, %v4318_v41  ;;  %v4326_v47 = vld [vmem:[%s8221_s26 + $0x98] sm:$0xf] }
  0x26   :  { %v4395_v42 = vor.u32 %v5878_v37, %v4392_v40  ;;  %v5870_v48 = vld [vmem:[%s8221_s26 + $0xd4] sm:$0xf0]  ;;  %v5862_v49 = vld [vmem:[%s8221_s26 + $0x9c] sm:$0xf]  ;;  %v4323_v50 = vor.u32 %v5861_v44, %v4320_v45  ;;  %v4254_v53 = vld [vmem:[%s8221_s26 + $0x10] sm:$0xf] }
  0x27   :  { %v4327_v51 = vor.u32 %v5870_v48, %v4326_v47  ;;  %v5853_v54 = vld [vmem:[%s8221_s26 + $0x4c] sm:$0xf0]  ;;  %v5845_v56 = vld [vmem:[%s8221_s26 + $0x14] sm:$0xf]  ;;  %v4262_v58 = vld [vmem:[%s8221_s26 + $0x18] sm:$0xf] }
  0x28   :  { %636 = vmatpush.bf16.msra.mxu2 %v4239_v4  ;;  %v4256_v57 = vld [vmem:[%s8221_s26 + $0x50] sm:$0xf0]  ;;  %v5854_v59 = vld [vmem:[%s8221_s26 + $0x54] sm:$0xf0]  ;;  %v5846_v60 = vld [vmem:[%s8221_s26 + $0x1c] sm:$0xf]  ;;  %v4255_v62 = vor.u32 %v5853_v54, %v4254_v53 }
  0x29   :  { %673 = vmatpush.bf16.msrb.mxu1 %v4379_v52  ;;  %v4328_v52 = vld [vmem:[%s8221_s26 + $0xd8] sm:$0xf0]  ;;  %v4259_v63 = vor.u32 %v5845_v56, %v4256_v57  ;;  %v5904_v18 = vld [vmem:[%s8221_s26 + $0x1e4] sm:$0xf0]  ;;  %v5896_v19 = vld [vmem:[%s8221_s26 + $0x1ac] sm:$0xf] }
  0x2a   :  { %v4331_v55 = vor.u32 %v5862_v49, %v4328_v52  ;;  %v4264_v61 = vld [vmem:[%s8221_s26 + $0x58] sm:$0xf0]  ;;  %v4400_v31 = vld [vmem:[%s8221_s26 + $0x160] sm:$0xf0]  ;;  %v4406_v32 = vld [vmem:[%s8221_s26 + $0x128] sm:$0xf] }
  0x2b   :  { %v4267_v2 = vor.u32 %v5846_v60, %v4264_v61  ;;  %v4408_v35 = vld [vmem:[%s8221_s26 + $0x168] sm:$0xf0]  ;;  %v4336_v43 = vld [vmem:[%s8221_s26 + $0xe0] sm:$0xf0]  ;;  %v4342_v44 = vld [vmem:[%s8221_s26 + $0xa8] sm:$0xf] }
  0x2c   :  { %v5872_v45 = vld [vmem:[%s8221_s26 + $0xe4] sm:$0xf0]  ;;  %v4344_v47 = vld [vmem:[%s8221_s26 + $0xe8] sm:$0xf0]  ;;  %v5847_v54 = vld [vmem:[%s8221_s26 + $0x24] sm:$0xf] }
  0x2d   :  { %674 = vmatpush.bf16.msrb.mxu1 %v4315_v0  ;;  %v4263_v0 = vor.u32 %v5854_v59, %v4262_v58  ;;  %v4343_v52 = vor.u32 %v5872_v45, %v4342_v44  ;;  %v4278_v56 = vld [vmem:[%s8221_s26 + $0x28] sm:$0xf]  ;;  %v5848_v58 = vld [vmem:[%s8221_s26 + $0x2c] sm:$0xf]  ;;  %v5858_v44 = vld [vmem:[%s8221_s26 + $0x74] sm:$0xf0] }
  0x2e   :  { %v5856_v57 = vld [vmem:[%s8221_s26 + $0x64] sm:$0xf0]  ;;  %v4280_v59 = vld [vmem:[%s8221_s26 + $0x68] sm:$0xf0]  ;;  %v5850_v45 = vld [vmem:[%s8221_s26 + $0x3c] sm:$0xf] }
  0x93   :  { %v108_v8 = vpop.f32.mrf.mxu0 }
  0x94   :  { %v109_v9 = vadd.f32 %v6236_v7, %v108_v8  ;;  %v5852_v7 = vld [vmem:[%s8221_s26 + $0x44] sm:$0xf0]  ;;  %v4243_v8 = vor.u32 %v5843_v3, %v4240_v5 }
  0x96   :  { %v112_v10 = vpack.c.bf16 %v109_v9, %v109_v9  ;;  %v4247_v9 = vor.u32 %v5852_v7, %v4246_v6  ;;  %649 = vmatpush.bf16.msra.mxu3 %v4243_v8  ;;  %v6238_v8 = vld [vmem:[%s8222_s1] ss:$0 sm:$0xff] }
  0x98   :  { %4235 = vmatmul.msk.bf16.vlgmr.msra.gmra.mxu1 %vm149_vm1, %v112_v10  ;;  %v5844_v10 = vld [vmem:[%s8221_s26 + $0xc] sm:$0xf]  ;;  %662 = vmatpush.bf16.msrb.mxu0 %v4247_v9 }
  0x9b   :  { %v110_v11 = vpop.f32.mrf.mxu0 }
  0x9c   :  { %v4248_v11 = vld [vmem:[%s8221_s26 + $0x48] sm:$0xf0]  ;;  %711 = vmatpush.bf16.msra.mxu0 %v4455_v22 }
  0xa0   :  { %712 = vmatpush.bf16.msra.mxu0 %v4391_v39  ;;  %v5871_v39 = vld [vmem:[%s8221_s26 + $0xdc] sm:$0xf0] }
  0xa4   :  { %713 = vmatpush.bf16.msra.mxu0 %v4327_v51  ;;  %v5855_v51 = vld [vmem:[%s8221_s26 + $0x5c] sm:$0xf0] }
  0xa8   :  { %714 = vmatpush.bf16.msra.mxu0 %v4263_v0  ;;  %v4279_v0 = vor.u32 %v5856_v57, %v4278_v56  ;;  %v5937_v56 = vld [vmem:[%s8224_s5 + $0xf0] sm:$0xff] }
  0xa9   :  { %v5913_v57 = vld [vmem:[%s8224_s5 + $0x30] sm:$0xff] }
 0x115   :  { %v162_v13 = vpop.f32.mrf.mxu1 }
 0x116   :  { %v163_v14 = vadd.f32 %v6237_v12, %v162_v13  ;;  %v4251_v12 = vor.u32 %v5844_v10, %v4248_v11  ;;  %v4446_v13 = vld [vmem:[%s8221_s26 + $0x190] sm:$0xf]  ;;  %v6239_v10 = vld [vmem:[%s8223_s6] ss:$0 sm:$0xff] }
 0x118   :  { %v166_v15 = vsel %vm149_vm1, %v163_v14, 0.0  ;;  %675 = vmatpush.bf16.msrb.mxu1 %v4251_v12 }
 0x119   :  { %167 = vadd.xlane.f32.xlu0 %v166_v15  ;;  %v5893_v15 = vld [vmem:[%s8221_s26 + $0x194] sm:$0xf] }
 0x11a   :  { %v4451_v21 = vor.u32 %v5893_v15, %v4448_v17  ;;  %v5895_v15 = vld [vmem:[%s8221_s26 + $0x1a4] sm:$0xf] }
 0x11c   :  { %698 = vmatpush.bf16.msrb.mxu3 %v4451_v21 }
 0x11d   :  { %v164_v16 = vpop.f32.mrf.mxu1 }
 0x120   :  { %699 = vmatpush.bf16.msrb.mxu3 %v4387_v34  ;;  %v5880_v34 = vld [vmem:[%s8221_s26 + $0x12c] sm:$0xf] }
 0x121   :  { %v4411_v41 = vor.u32 %v5880_v34, %v4408_v35  ;;  %v4360_v34 = vld [vmem:[%s8221_s26 + $0xf8] sm:$0xf0] }
 0x124   :  { %700 = vmatpush.bf16.msrb.mxu3 %v4323_v50  ;;  %v4270_v50 = vld [vmem:[%s8221_s26 + $0x20] sm:$0xf] }
 0x125   :  { %v4271_v60 = vor.u32 %v5855_v51, %v4270_v50  ;;  %v5930_v51 = vld [vmem:[%s8224_s5 + $0xb8] sm:$0xff] }
 0x128   :  { %701 = vmatpush.bf16.msrb.mxu3 %v4259_v63  ;;  %v5905_v63 = vld [vmem:[%s8221_s26 + $0x1ec] sm:$0xf0] }
 0x18c   :  { %v168_v24 = vpop.xlane.xlu0 %167 }
 0x18d   :  { %v176_v25 = vmul.f32 %v6417_v23, %v168_v24  ;;  %v5894_v24 = vld [vmem:[%s8221_s26 + $0x19c] sm:$0xf] }
 0x18f   :  { %v6420_v26 = vsub.f32 %v163_v14, %v176_v25  ;;  %v5901_v14 = vld [vmem:[%s8221_s26 + $0x1cc] sm:$0xf0]  ;;  %v4456_v25 = vld [vmem:[%s8221_s26 + $0x1d8] sm:$0xf0] }
 0x190   :  { %v4447_v16 = vor.u32 %v5901_v14, %v4446_v13  ;;  %v4459_v29 = vor.u32 %v5894_v24, %v4456_v25  ;;  %v4462_v13 = vld [vmem:[%s8221_s26 + $0x1a0] sm:$0xf] }
 0x191   :  { %v178_v27 = vmul.f32 %v6420_v26, %v6420_v26  ;;  %v5903_v14 = vld [vmem:[%s8221_s26 + $0x1dc] sm:$0xf0] }
 0x192   :  { %685 = vmatpush.bf16.msrb.mxu2 %v4447_v16  ;;  %724 = vmatpush.bf16.msra.mxu1 %v4459_v29  ;;  %v4464_v16 = vld [vmem:[%s8221_s26 + $0x1e0] sm:$0xf0]  ;;  %v4463_v22 = vor.u32 %v5903_v14, %v4462_v13  ;;  %v4398_v25 = vld [vmem:[%s8221_s26 + $0x120] sm:$0xf]  ;;  %v5881_v14 = vld [vmem:[%s8221_s26 + $0x134] sm:$0xf] }
 0x193   :  { %v179_v28 = vsel %vm149_vm1, %v178_v27, 0.0  ;;  %v4382_v27 = vld [vmem:[%s8221_s26 + $0x110] sm:$0xf]  ;;  %v4467_v24 = vor.u32 %v5895_v15, %v4464_v16  ;;  %v4416_v15 = vld [vmem:[%s8221_s26 + $0x170] sm:$0xf0] }
 0x194   :  { %180 = vadd.xlane.f32.xlu0 %v179_v28  ;;  %v4383_v33 = vor.u32 %v5885_v30, %v4382_v27  ;;  %v5887_v27 = vld [vmem:[%s8221_s26 + $0x15c] sm:$0xf0]  ;;  %v5879_v30 = vld [vmem:[%s8221_s26 + $0x124] sm:$0xf]  ;;  %v4422_v16 = vld [vmem:[%s8221_s26 + $0x138] sm:$0xf] }
 0x195   :  { %v4399_v36 = vor.u32 %v5887_v27, %v4398_v25  ;;  %v4403_v37 = vor.u32 %v5879_v30, %v4400_v31  ;;  %v5873_v25 = vld [vmem:[%s8221_s26 + $0xec] sm:$0xf0]  ;;  %v4352_v30 = vld [vmem:[%s8221_s26 + $0xf0] sm:$0xf0]  ;;  %v4358_v31 = vld [vmem:[%s8221_s26 + $0xb8] sm:$0xf] }
 0x196   :  { %686 = vmatpush.bf16.msrb.mxu2 %v4383_v33  ;;  %725 = vmatpush.bf16.msra.mxu1 %v4395_v42  ;;  %v5888_v33 = vld [vmem:[%s8221_s26 + $0x164] sm:$0xf0]  ;;  %v5863_v42 = vld [vmem:[%s8221_s26 + $0xa4] sm:$0xf] }
 0x197   :  { %v4407_v40 = vor.u32 %v5888_v33, %v4406_v32  ;;  %v4339_v49 = vor.u32 %v5863_v42, %v4336_v43  ;;  %v5874_v32 = vld [vmem:[%s8221_s26 + $0xf4] sm:$0xf0]  ;;  %v5866_v33 = vld [vmem:[%s8221_s26 + $0xbc] sm:$0xf]  ;;  %v4288_v42 = vld [vmem:[%s8221_s26 + $0x70] sm:$0xf0] }
 0x198   :  { %v4294_v43 = vld [vmem:[%s8221_s26 + $0x38] sm:$0xf] }
 0x19a   :  { %687 = vmatpush.bf16.msrb.mxu2 %v4319_v46  ;;  %726 = vmatpush.bf16.msra.mxu1 %v4331_v55  ;;  %v5864_v46 = vld [vmem:[%s8221_s26 + $0xac] sm:$0xf]  ;;  %v4272_v55 = vld [vmem:[%s8221_s26 + $0x60] sm:$0xf0] }
 0x19b   :  { %v4347_v53 = vor.u32 %v5864_v46, %v4344_v47  ;;  %v4275_v61 = vor.u32 %v5847_v54, %v4272_v55  ;;  %v4296_v46 = vld [vmem:[%s8221_s26 + $0x78] sm:$0xf0]  ;;  %v5929_v55 = vld [vmem:[%s8224_s5 + $0xb0] sm:$0xff] }
 0x19c   :  { %v4299_v50 = vor.u32 %v5850_v45, %v4296_v46  ;;  %v5922_v54 = vld [vmem:[%s8224_s5 + $0x78] sm:$0xff]  ;;  %v5941_v45 = vld [vmem:[%s8224_s5 + $0x110] sm:$0xff] }
 0x19d   :  { %v5949_v46 = vld [vmem:[%s8224_s5 + $0x150] sm:$0xff] }
 0x19e   :  { %688 = vmatpush.bf16.msrb.mxu2 %v4255_v62  ;;  %727 = vmatpush.bf16.msra.mxu1 %v4267_v2  ;;  %v4478_v62 = vld [vmem:[%s8221_s26 + $0x1b0] sm:$0xf]  ;;  %v5897_v2 = vld [vmem:[%s8221_s26 + $0x1b4] sm:$0xf] }
 0x207   :  { %v181_v20 = vpop.xlane.xlu0 %180 }
 0x208   :  { %v182_v28 = vmul.f32 %v181_v20, %v6417_v23  ;;  %v4472_v20 = vld [vmem:[%s8221_s26 + $0x1e8] sm:$0xf0] }
 0x209   :  { %v4475_v29 = vor.u32 %v5896_v19, %v4472_v20  ;;  %v4424_v19 = vld [vmem:[%s8221_s26 + $0x178] sm:$0xf0] }
 0x20a   :  { %v183_v38 = vadd.f32 1e-05, %v182_v28 }
 0x20c   :  { %6252 = vrsqrt.f32 %v183_v38  ;;  %vm190_vm4 = vweird.f32 %v183_v38 }
 0x212   :  { %v6253_v1 = vpop.eup %6252 }
 0x213   :  { %v185_v3 = vmul.f32 %v6253_v1, %v183_v38  ;;  %vm191_vm3 = vweird.f32 %v6253_v1  ;;  %v4334_v38 = vld [vmem:[%s8221_s26 + $0xa0] sm:$0xf] }
 0x214   :  { %vm192_vm5 = vmor %vm190_vm4, %vm191_vm3  ;;  %v4335_v48 = vor.u32 %v5871_v39, %v4334_v38  ;;  %v5857_v38 = vld [vmem:[%s8221_s26 + $0x6c] sm:$0xf0]  ;;  %v4359_v39 = vor.u32 %v5874_v32, %v4358_v31  ;;  %v5944_v31 = vld [vmem:[%s8224_s5 + $0x128] sm:$0xff] }
 0x215   :  { %v186_v4 = vmul.f32 %v6253_v1, %v185_v3  ;;  %v4480_v3 = vld [vmem:[%s8221_s26 + $0x1f0] sm:$0xf0]  ;;  %v5952_v32 = vld [vmem:[%s8224_s5 + $0x168] sm:$0xff] }
 0x217   :  { %v187_v5 = vmul.f32 0.5, %v186_v4  ;;  %v4486_v4 = vld [vmem:[%s8221_s26 + $0x1b8] sm:$0xf] }
 0x219   :  { %v188_v6 = vsub.f32 1.5, %v187_v5  ;;  %v5906_v5 = vld [vmem:[%s8221_s26 + $0x1f4] sm:$0xf0] }
 0x21b   :  { %v189_v7 = vmul.f32 %v6253_v1, %v188_v6  ;;  %v5898_v6 = vld [vmem:[%s8221_s26 + $0x1bc] sm:$0xf] }
 0x21d   :  { %v193_v9 = vsel %vm192_vm5, %v6253_v1, %v189_v7  ;;  %v4283_v1 = vor.u32 %v5848_v58, %v4280_v59  ;;  %v4488_v7 = vld [vmem:[%s8221_s26 + $0x1f8] sm:$0xf0]  ;;  %v5921_v58 = vld [vmem:[%s8224_s5 + $0x70] sm:$0xff]  ;;  %v5928_v59 = vld [vmem:[%s8224_s5 + $0xa8] sm:$0xff] }
 0x21e   :  { %v194_v11 = vmul.f32 %v193_v9, %v6420_v26  ;;  %v4470_v26 = vld [vmem:[%s8221_s26 + $0x1a8] sm:$0xf]  ;;  %v4483_v9 = vor.u32 %v5897_v2, %v4480_v3  ;;  %v4491_v13 = vor.u32 %v5898_v6, %v4488_v7  ;;  %v5919_v2 = vld [vmem:[%s8224_s5 + $0x60] sm:$0xff]  ;;  %v5926_v3 = vld [vmem:[%s8224_s5 + $0x98] sm:$0xff] }
 0x21f   :  { %v4471_v28 = vor.u32 %v5904_v18, %v4470_v26  ;;  %v5890_v26 = vld [vmem:[%s8221_s26 + $0x174] sm:$0xf0]  ;;  %v5882_v18 = vld [vmem:[%s8221_s26 + $0x13c] sm:$0xf]  ;;  %v5925_v7 = vld [vmem:[%s8224_s5 + $0x90] sm:$0xff] }
 0x220   :  { %v199_v12 = vmul.f32 %v6238_v8, %v194_v11  ;;  %v4479_v8 = vor.u32 %v5905_v63, %v4478_v62  ;;  %v5889_v11 = vld [vmem:[%s8221_s26 + $0x16c] sm:$0xf0]  ;;  %v4423_v27 = vor.u32 %v5890_v26, %v4422_v16  ;;  %v5920_v62 = vld [vmem:[%s8224_s5 + $0x68] sm:$0xff]  ;;  %v5927_v63 = vld [vmem:[%s8224_s5 + $0xa0] sm:$0xff] }
 0x221   :  { %v5918_v6 = vld [vmem:[%s8224_s5 + $0x58] sm:$0xff] }
 0x222   :  { %v6640_v17 = vadd.f32 %v6239_v10, %v199_v12  ;;  %v4414_v10 = vld [vmem:[%s8221_s26 + $0x130] sm:$0xf]  ;;  %v4487_v12 = vor.u32 %v5906_v5, %v4486_v4  ;;  %v5934_v4 = vld [vmem:[%s8224_s5 + $0xd8] sm:$0xff] }
 0x223   :  { %v4415_v20 = vor.u32 %v5889_v11, %v4414_v10  ;;  %v5910_v5 = vld [vmem:[%s8224_s5 + $0x18] sm:$0xff]  ;;  %v5924_v10 = vld [vmem:[%s8224_s5 + $0x88] sm:$0xff] }
 0x224   :  { %v6653_v21 = vpack.c.bf16 %v6640_v17, %v6640_v17  ;;  %v5932_v11 = vld [vmem:[%s8224_s5 + $0xc8] sm:$0xff]  ;;  %v5962_v16 = vld [vmem:[%s8224_s5 + $0x1b8] sm:$0xff] }
 0x225   :  { %v5970_v26 = vld [vmem:[%s8224_s5 + $0x1f8] sm:$0xff] }
 0x226   :  { %4492 = vmatmul.msk.bf16.vlgmr.msra.gmra.mxu2 %vm149_vm1, %v6653_v21  ;;  %4493 = vmatmul.msk.bf16.vlgmr.msra.gmra.mxu3 %vm149_vm1, %v6653_v21 }
 0x227   :  { %4494 = vmatmul.msk.bf16.vlgmr.msrb.gmra.mxu0 %vm149_vm1, %v6653_v21  ;;  %4495 = vmatmul.msk.bf16.vlgmr.msrb.gmra.mxu1 %vm149_vm1, %v6653_v21 }
 0x228   :  { %737 = vmatpush.bf16.msra.mxu2 %v4463_v22  ;;  %750 = vmatpush.bf16.msra.mxu3 %v4467_v24  ;;  %v4419_v22 = vor.u32 %v5881_v14, %v4416_v15  ;;  %v4350_v24 = vld [vmem:[%s8221_s26 + $0xb0] sm:$0xf]  ;;  %v5923_v14 = vld [vmem:[%s8224_s5 + $0x80] sm:$0xff] }
 0x229   :  { %763 = vmatpush.bf16.msrb.mxu0 %v4471_v28  ;;  %776 = vmatpush.bf16.msrb.mxu1 %v4475_v29  ;;  %v4427_v28 = vor.u32 %v5882_v18, %v4424_v19  ;;  %v5865_v29 = vld [vmem:[%s8221_s26 + $0xb4] sm:$0xf]  ;;  %v4351_v35 = vor.u32 %v5873_v25, %v4350_v24  ;;  %v5931_v15 = vld [vmem:[%s8224_s5 + $0xc0] sm:$0xff] }
 0x22a   :  { %v5907_v18 = vld [vmem:[%s8224_s5] sm:$0xff]  ;;  %v5961_v24 = vld [vmem:[%s8224_s5 + $0x1b0] sm:$0xff] }
 0x22b   :  { %v5915_v19 = vld [vmem:[%s8224_s5 + $0x40] sm:$0xff]  ;;  %v5969_v25 = vld [vmem:[%s8224_s5 + $0x1f0] sm:$0xff] }
 0x22c   :  { %738 = vmatpush.bf16.msra.mxu2 %v4399_v36  ;;  %751 = vmatpush.bf16.msra.mxu3 %v4403_v37  ;;  %v4355_v36 = vor.u32 %v5865_v29, %v4352_v30  ;;  %v4286_v37 = vld [vmem:[%s8221_s26 + $0x30] sm:$0xf]  ;;  %v5960_v29 = vld [vmem:[%s8224_s5 + $0x1a8] sm:$0xff] }
 0x22d   :  { %764 = vmatpush.bf16.msrb.mxu0 %v4407_v40  ;;  %777 = vmatpush.bf16.msrb.mxu1 %v4411_v41  ;;  %v4363_v40 = vor.u32 %v5866_v33, %v4360_v34  ;;  %v5849_v41 = vld [vmem:[%s8221_s26 + $0x34] sm:$0xf]  ;;  %v4287_v47 = vor.u32 %v5857_v38, %v4286_v37  ;;  %v5968_v30 = vld [vmem:[%s8224_s5 + $0x1e8] sm:$0xff]  ;;  %v5959_v33 = vld [vmem:[%s8224_s5 + $0x1a0] sm:$0xff] }
 0x22e   :  { %v5967_v34 = vld [vmem:[%s8224_s5 + $0x1e0] sm:$0xff]  ;;  %v5958_v37 = vld [vmem:[%s8224_s5 + $0x198] sm:$0xff] }
 0x22f   :  { %v5966_v38 = vld [vmem:[%s8224_s5 + $0x1d8] sm:$0xff] }
 0x230   :  { %739 = vmatpush.bf16.msra.mxu2 %v4335_v48  ;;  %752 = vmatpush.bf16.msra.mxu3 %v4339_v49  ;;  %v4291_v48 = vor.u32 %v5849_v41, %v4288_v42  ;;  %v4295_v49 = vor.u32 %v5858_v44, %v4294_v43  ;;  %v5942_v41 = vld [vmem:[%s8224_s5 + $0x118] sm:$0xff]  ;;  %v5956_v43 = vld [vmem:[%s8224_s5 + $0x188] sm:$0xff] }
 0x231   :  { %765 = vmatpush.bf16.msrb.mxu0 %v4343_v52  ;;  %778 = vmatpush.bf16.msrb.mxu1 %v4347_v53  ;;  %v5938_v52 = vld [vmem:[%s8224_s5 + $0xf8] sm:$0xff]  ;;  %v5964_v44 = vld [vmem:[%s8224_s5 + $0x1c8] sm:$0xff] }
 0x232   :  { %v5914_v53 = vld [vmem:[%s8224_s5 + $0x38] sm:$0xff] }
 0x233   :  { %v5950_v42 = vld [vmem:[%s8224_s5 + $0x158] sm:$0xff] }
 0x234   :  { %740 = vmatpush.bf16.msra.mxu2 %v4271_v60  ;;  %753 = vmatpush.bf16.msra.mxu3 %v4275_v61  ;;  %v5936_v60 = vld [vmem:[%s8224_s5 + $0xe8] sm:$0xff] }
 0x235   :  { %766 = vmatpush.bf16.msrb.mxu0 %v4279_v0  ;;  %779 = vmatpush.bf16.msrb.mxu1 %v4283_v1  ;;  %v5912_v61 = vld [vmem:[%s8224_s5 + $0x28] sm:$0xff]  ;;  %v5935_v0 = vld [vmem:[%s8224_s5 + $0xe0] sm:$0xff] }
 0x236   :  { %4496 = vmatmul.msk.bf16.vlgmr.msrb.gmra.mxu2 %vm149_vm1, %v6653_v21  ;;  %4497 = vmatmul.msk.bf16.vlgmr.msrb.gmra.mxu3 %vm149_vm1, %v6653_v21  ;;  %v5911_v1 = vld [vmem:[%s8224_s5 + $0x20] sm:$0xff] }
 0x237   :  { %4498 = vmatmul.msk.bf16.vlgmr.msra.gmra.mxu0 %vm149_vm1, %v6653_v21  ;;  %4499 = vmatmul.msk.bf16.vlgmr.msra.gmra.mxu1 %vm149_vm1, %v6653_v21 }
 0x238   :  { %789 = vmatpush.bf16.msrb.mxu2 %v4479_v8  ;;  %802 = vmatpush.bf16.msrb.mxu3 %v4483_v9  ;;  %v5933_v8 = vld [vmem:[%s8224_s5 + $0xd0] sm:$0xff] }
 0x239   :  { %815 = vmatpush.bf16.msra.mxu0 %v4487_v12  ;;  %828 = vmatpush.bf16.msra.mxu1 %v4491_v13  ;;  %v5909_v9 = vld [vmem:[%s8224_s5 + $0x10] sm:$0xff]  ;;  %v5908_v12 = vld [vmem:[%s8224_s5 + $0x8] sm:$0xff] }
 0x23a   :  { %v5916_v13 = vld [vmem:[%s8224_s5 + $0x48] sm:$0xff] }
 0x23c   :  { %790 = vmatpush.bf16.msrb.mxu2 %v4415_v20  ;;  %803 = vmatpush.bf16.msrb.mxu3 %v4419_v22  ;;  %v5946_v20 = vld [vmem:[%s8224_s5 + $0x138] sm:$0xff] }
 0x23d   :  { %816 = vmatpush.bf16.msra.mxu0 %v4423_v27  ;;  %829 = vmatpush.bf16.msra.mxu1 %v4427_v28  ;;  %v5954_v22 = vld [vmem:[%s8224_s5 + $0x178] sm:$0xff]  ;;  %v5945_v27 = vld [vmem:[%s8224_s5 + $0x130] sm:$0xff] }
 0x23e   :  { %v5953_v28 = vld [vmem:[%s8224_s5 + $0x170] sm:$0xff] }
 0x240   :  { %791 = vmatpush.bf16.msrb.mxu2 %v4351_v35  ;;  %804 = vmatpush.bf16.msrb.mxu3 %v4355_v36  ;;  %v5943_v35 = vld [vmem:[%s8224_s5 + $0x120] sm:$0xff] }
 0x241   :  { %817 = vmatpush.bf16.msra.mxu0 %v4359_v39  ;;  %830 = vmatpush.bf16.msra.mxu1 %v4363_v40  ;;  %v5951_v36 = vld [vmem:[%s8224_s5 + $0x160] sm:$0xff]  ;;  %v5957_v39 = vld [vmem:[%s8224_s5 + $0x190] sm:$0xff] }
 0x242   :  { %v5965_v40 = vld [vmem:[%s8224_s5 + $0x1d0] sm:$0xff] }
 0x244   :  { %792 = vmatpush.bf16.msrb.mxu2 %v4287_v47  ;;  %805 = vmatpush.bf16.msrb.mxu3 %v4291_v48  ;;  %v5955_v47 = vld [vmem:[%s8224_s5 + $0x180] sm:$0xff] }
 0x245   :  { %818 = vmatpush.bf16.msra.mxu0 %v4295_v49  ;;  %831 = vmatpush.bf16.msra.mxu1 %v4299_v50  ;;  %v5963_v48 = vld [vmem:[%s8224_s5 + $0x1c0] sm:$0xff]  ;;  %v5940_v49 = vld [vmem:[%s8224_s5 + $0x108] sm:$0xff] }
 0x246   :  { %4500 = vmatmul.msk.bf16.vlgmr.msra.gmra.mxu2 %vm149_vm1, %v6653_v21  ;;  %4501 = vmatmul.msk.bf16.vlgmr.msra.gmra.mxu3 %vm149_vm1, %v6653_v21  ;;  %v5948_v50 = vld [vmem:[%s8224_s5 + $0x148] sm:$0xff] }
 0x247   :  { %4502 = vmatmul.msk.bf16.vlgmr.msrb.gmra.mxu0 %vm149_vm1, %v6653_v21  ;;  %4503 = vmatmul.msk.bf16.vlgmr.msrb.gmra.mxu1 %vm149_vm1, %v6653_v21 }
 0x248   :  { %1897 = vmatpush.bf16.msra.mxu2 %v5914_v53  ;;  %1910 = vmatpush.bf16.msra.mxu3 %v5922_v54  ;;  %v7050_v53 = vld [vmem:[%s8225_s0] sm:$0xff] }
 0x249   :  { %1923 = vmatpush.bf16.msrb.mxu0 %v5930_v51  ;;  %1936 = vmatpush.bf16.msrb.mxu1 %v5938_v52  ;;  %v5939_v51 = vld [vmem:[%s8224_s5 + $0x100] sm:$0xff]  ;;  %v276_v54 = vperm.slane %v7050_v53, 2 }
 0x24a   :  { %v5947_v52 = vld [vmem:[%s8224_s5 + $0x140] sm:$0xff] }
 0x24c   :  { %1898 = vmatpush.bf16.msra.mxu2 %v5913_v57  ;;  %1911 = vmatpush.bf16.msra.mxu3 %v5921_v58 }
 0x24d   :  { %1924 = vmatpush.bf16.msrb.mxu0 %v5929_v55  ;;  %1937 = vmatpush.bf16.msrb.mxu1 %v5937_v56  ;;  %v277_v55 = vperm.slane %v7050_v53, 3 }
 0x250   :  { %1899 = vmatpush.bf16.msra.mxu2 %v5912_v61  ;;  %1912 = vmatpush.bf16.msra.mxu3 %v5920_v62  ;;  %v275_v61 = vperm.slane %v7050_v53, 1 }
 0x251   :  { %1925 = vmatpush.bf16.msrb.mxu0 %v5928_v59  ;;  %1938 = vmatpush.bf16.msrb.mxu1 %v5936_v60  ;;  %v274_v60 = vperm.slane %v7050_v53, 0 }
 0x254   :  { %1900 = vmatpush.bf16.msra.mxu2 %v5911_v1  ;;  %1913 = vmatpush.bf16.msra.mxu3 %v5919_v2  ;;  %v6002_v1 = vld [vmem:[%s8224_s5 + $0x2f8] sm:$0xff] }
 0x255   :  { %1926 = vmatpush.bf16.msrb.mxu0 %v5927_v63  ;;  %1939 = vmatpush.bf16.msrb.mxu1 %v5935_v0  ;;  %v5994_v0 = vld [vmem:[%s8224_s5 + $0x2b8] sm:$0xff] }
 0x256   :  { %4504 = vmatmul.msk.bf16.vlgmr.msrb.gmra.mxu2 %vm149_vm1, %v6653_v21  ;;  %4505 = vmatmul.msk.bf16.vlgmr.msrb.gmra.mxu3 %vm149_vm1, %v6653_v21 }
 0x257   :  { %4506 = vmatmul.msk.bf16.vlgmr.msra.gmra.mxu0 %vm149_vm1, %v6653_v21  ;;  %4507 = vmatmul.msk.bf16.vlgmr.msra.gmra.mxu1 %vm149_vm1, %v6653_v21  ;;  %v5917_v21 = vld [vmem:[%s8224_s5 + $0x50] sm:$0xff] }
 0x258   :  { %1901 = vmatpush.bf16.msra.mxu2 %v5910_v5  ;;  %1914 = vmatpush.bf16.msra.mxu3 %v5918_v6 }
 0x259   :  { %1927 = vmatpush.bf16.msrb.mxu0 %v5926_v3  ;;  %1940 = vmatpush.bf16.msrb.mxu1 %v5934_v4 }
 0x25c   :  { %1902 = vmatpush.bf16.msra.mxu2 %v5909_v9  ;;  %1915 = vmatpush.bf16.msra.mxu3 %v5917_v21 }
 0x25d   :  { %1928 = vmatpush.bf16.msrb.mxu0 %v5925_v7  ;;  %1941 = vmatpush.bf16.msrb.mxu1 %v5933_v8 }
 0x260   :  { %1903 = vmatpush.bf16.msra.mxu2 %v5908_v12  ;;  %1916 = vmatpush.bf16.msra.mxu3 %v5916_v13  ;;  %v6001_v12 = vld [vmem:[%s8224_s5 + $0x2f0] sm:$0xff] }
 0x261   :  { %1929 = vmatpush.bf16.msrb.mxu0 %v5924_v10  ;;  %1942 = vmatpush.bf16.msrb.mxu1 %v5932_v11  ;;  %v5993_v11 = vld [vmem:[%s8224_s5 + $0x2b0] sm:$0xff] }
 0x264   :  { %1904 = vmatpush.bf16.msra.mxu2 %v5907_v18  ;;  %1917 = vmatpush.bf16.msra.mxu3 %v5915_v19  ;;  %v6000_v18 = vld [vmem:[%s8224_s5 + $0x2e8] sm:$0xff] }
 0x265   :  { %1930 = vmatpush.bf16.msrb.mxu0 %v5923_v14  ;;  %1943 = vmatpush.bf16.msrb.mxu1 %v5931_v15  ;;  %v5978_v15 = vld [vmem:[%s8224_s5 + $0x238] sm:$0xff] }
 0x268   :  { %1949 = vmatpush.bf16.msrb.mxu2 %v5946_v20  ;;  %1962 = vmatpush.bf16.msrb.mxu3 %v5954_v22  ;;  %v280_v22 = vperm.slane %v7050_v53, 6 }
 0x269   :  { %1975 = vmatpush.bf16.msra.mxu0 %v5962_v16  ;;  %1988 = vmatpush.bf16.msra.mxu1 %v5970_v26  ;;  %v5986_v16 = vld [vmem:[%s8224_s5 + $0x278] sm:$0xff]  ;;  %v5992_v26 = vld [vmem:[%s8224_s5 + $0x2a8] sm:$0xff] }
 0x26c   :  { %1950 = vmatpush.bf16.msrb.mxu2 %v5945_v27  ;;  %1963 = vmatpush.bf16.msrb.mxu3 %v5953_v28  ;;  %v5985_v27 = vld [vmem:[%s8224_s5 + $0x270] sm:$0xff] }
 0x26d   :  { %1976 = vmatpush.bf16.msra.mxu0 %v5961_v24  ;;  %1989 = vmatpush.bf16.msra.mxu1 %v5969_v25  ;;  %v281_v24 = vperm.slane %v7050_v53, 7  ;;  %v5977_v25 = vld [vmem:[%s8224_s5 + $0x230] sm:$0xff] }
 0x270   :  { %1951 = vmatpush.bf16.msrb.mxu2 %v5944_v31  ;;  %1964 = vmatpush.bf16.msrb.mxu3 %v5952_v32  ;;  %v5999_v31 = vld [vmem:[%s8224_s5 + $0x2e0] sm:$0xff] }
 0x271   :  { %1977 = vmatpush.bf16.msra.mxu0 %v5960_v29  ;;  %1990 = vmatpush.bf16.msra.mxu1 %v5968_v30  ;;  %v5991_v30 = vld [vmem:[%s8224_s5 + $0x2a0] sm:$0xff] }
 0x274   :  { %1952 = vmatpush.bf16.msrb.mxu2 %v5943_v35  ;;  %1965 = vmatpush.bf16.msrb.mxu3 %v5951_v36  ;;  %v5984_v35 = vld [vmem:[%s8224_s5 + $0x268] sm:$0xff]  ;;  %v278_v36 = vperm.slane %v7050_v53, 4 }
 0x275   :  { %1978 = vmatpush.bf16.msra.mxu0 %v5959_v33  ;;  %1991 = vmatpush.bf16.msra.mxu1 %v5967_v34  ;;  %v5976_v34 = vld [vmem:[%s8224_s5 + $0x228] sm:$0xff] }
 0x278   :  { %1953 = vmatpush.bf16.msrb.mxu2 %v5942_v41  ;;  %1966 = vmatpush.bf16.msrb.mxu3 %v5950_v42  ;;  %v5998_v41 = vld [vmem:[%s8224_s5 + $0x2d8] sm:$0xff] }
 0x279   :  { %1979 = vmatpush.bf16.msra.mxu0 %v5958_v37  ;;  %1992 = vmatpush.bf16.msra.mxu1 %v5966_v38  ;;  %v279_v37 = vperm.slane %v7050_v53, 5 }
 0x27c   :  { %1954 = vmatpush.bf16.msrb.mxu2 %v5941_v45  ;;  %1967 = vmatpush.bf16.msrb.mxu3 %v5949_v46 }
 0x27d   :  { %1980 = vmatpush.bf16.msra.mxu0 %v5957_v39  ;;  %1993 = vmatpush.bf16.msra.mxu1 %v5965_v40  ;;  %v5990_v40 = vld [vmem:[%s8224_s5 + $0x298] sm:$0xff] }
 0x280   :  { %1955 = vmatpush.bf16.msrb.mxu2 %v5940_v49  ;;  %1968 = vmatpush.bf16.msrb.mxu3 %v5948_v50  ;;  %v5983_v49 = vld [vmem:[%s8224_s5 + $0x260] sm:$0xff] }
 0x281   :  { %1981 = vmatpush.bf16.msra.mxu0 %v5956_v43  ;;  %1994 = vmatpush.bf16.msra.mxu1 %v5964_v44 }
 0x284   :  { %1956 = vmatpush.bf16.msrb.mxu2 %v5939_v51  ;;  %1969 = vmatpush.bf16.msrb.mxu3 %v5947_v52 }
 0x285   :  { %1982 = vmatpush.bf16.msra.mxu0 %v5955_v47  ;;  %1995 = vmatpush.bf16.msra.mxu1 %v5963_v48  ;;  %v5975_v48 = vld [vmem:[%s8224_s5 + $0x220] sm:$0xff] }
 0x2a4   :  { %v664_v56 = vpop.f32.mrf.mxu0  ;;  %v677_v57 = vpop.f32.mrf.mxu1 }
 0x2a5   :  { %v665_v58 = vadd.f32 %v664_v56, %v276_v54  ;;  %v678_v59 = vadd.f32 %v677_v57, %v277_v55  ;;  %v5989_v54 = vld [vmem:[%s8224_s5 + $0x290] sm:$0xff] }
 0x2a6   :  { %v5997_v55 = vld [vmem:[%s8224_s5 + $0x2d0] sm:$0xff] }
 0x2a7   :  { %v839_v62 = vmax.f32 %v665_v58, 0.0  ;;  %v840_v63 = vmax.f32 %v678_v59, 0.0  ;;  %v5974_v58 = vld [vmem:[%s8224_s5 + $0x218] sm:$0xff] }
 0x2a8   :  { %v5982_v59 = vld [vmem:[%s8224_s5 + $0x258] sm:$0xff] }
 0x2a9   :  { %v855_v2 = vpack.c.bf16 %v839_v62, %v839_v62  ;;  %v856_v3 = vpack.c.bf16 %v840_v63, %v840_v63  ;;  %v638_v4 = vpop.f32.mrf.mxu2  ;;  %v651_v5 = vpop.f32.mrf.mxu3  ;;  %v5996_v62 = vld [vmem:[%s8224_s5 + $0x2c8] sm:$0xff] }
 0x2aa   :  { %v639_v6 = vadd.f32 %v638_v4, %v274_v60  ;;  %v652_v7 = vadd.f32 %v651_v5, %v275_v61  ;;  %v7129_v60 = vld [vmem:[%s8225_s0 + $0x8] sm:$0xff]  ;;  %v5981_v4 = vld [vmem:[%s8224_s5 + $0x250] sm:$0xff] }
 0x2ab   :  { %1931 = vmatmul.bf16.vlgmr.msrb.gmra.mxu0 %v855_v2  ;;  %1944 = vmatmul.bf16.vlgmr.msrb.gmra.mxu1 %v856_v3  ;;  %v5988_v61 = vld [vmem:[%s8224_s5 + $0x288] sm:$0xff]  ;;  %v285_v2 = vperm.slane %v7129_v60, 3  ;;  %v5973_v3 = vld [vmem:[%s8224_s5 + $0x210] sm:$0xff] }
 0x2ac   :  { %v837_v8 = vmax.f32 %v639_v6, 0.0  ;;  %v838_v9 = vmax.f32 %v652_v7, 0.0  ;;  %2027 = vmatpush.bf16.msrb.mxu0 %v5994_v0  ;;  %2040 = vmatpush.bf16.msrb.mxu1 %v6002_v1  ;;  %v666_v21 = vpop.f32.mrf.mxu0  ;;  %v679_v10 = vpop.f32.mrf.mxu1  ;;  %v284_v1 = vperm.slane %v7129_v60, 2  ;;  %v5987_v7 = vld [vmem:[%s8224_s5 + $0x280] sm:$0xff] }
 0x2ad   :  { %v6026_v10 = vld [vmem:[%s8224_s5 + $0x3b8] sm:$0xff] }
 0x2ae   :  { %v853_v13 = vpack.c.bf16 %v837_v8, %v837_v8  ;;  %v854_v14 = vpack.c.bf16 %v838_v9, %v838_v9  ;;  %v5995_v8 = vld [vmem:[%s8224_s5 + $0x2c0] sm:$0xff] }
 0x2b0   :  { %2028 = vmatpush.bf16.msrb.mxu0 %v5993_v11  ;;  %2041 = vmatpush.bf16.msrb.mxu1 %v6001_v12  ;;  %v6034_v11 = vld [vmem:[%s8224_s5 + $0x3f8] sm:$0xff]  ;;  %v5972_v12 = vld [vmem:[%s8224_s5 + $0x208] sm:$0xff] }
 0x2b1   :  { %1905 = vmatmul.bf16.vlgmr.msra.gmra.mxu2 %v853_v13  ;;  %1918 = vmatmul.bf16.vlgmr.msra.gmra.mxu3 %v854_v14  ;;  %v640_v19 = vpop.f32.mrf.mxu2  ;;  %v653_v20 = vpop.f32.mrf.mxu3  ;;  %v5980_v13 = vld [vmem:[%s8224_s5 + $0x248] sm:$0xff]  ;;  %v282_v14 = vperm.slane %v7129_v60, 0 }
 0x2b2   :  { %2001 = vmatpush.bf16.msra.mxu2 %v5978_v15  ;;  %2014 = vmatpush.bf16.msra.mxu3 %v5986_v16  ;;  %v283_v15 = vperm.slane %v7129_v60, 1 }
 0x2b4   :  { %2029 = vmatpush.bf16.msrb.mxu0 %v5992_v26  ;;  %2042 = vmatpush.bf16.msrb.mxu1 %v6000_v18  ;;  %v716_v28 = vpop.f32.mrf.mxu0  ;;  %v729_v29 = vpop.f32.mrf.mxu1 }
 0x2b5   :  { %v717_v32 = vadd.f32 %v716_v28, %v280_v22  ;;  %v730_v33 = vadd.f32 %v729_v29, %v281_v24  ;;  %v6025_v24 = vld [vmem:[%s8224_s5 + $0x3b0] sm:$0xff]  ;;  %v5971_v29 = vld [vmem:[%s8224_s5 + $0x200] sm:$0xff] }
 0x2b6   :  { %2002 = vmatpush.bf16.msra.mxu2 %v5977_v25  ;;  %2015 = vmatpush.bf16.msra.mxu3 %v5985_v27  ;;  %v6033_v25 = vld [vmem:[%s8224_s5 + $0x3f0] sm:$0xff] }
 0x2b7   :  { %v843_v38 = vmax.f32 %v717_v32, 0.0  ;;  %v844_v39 = vmax.f32 %v730_v33, 0.0  ;;  %v6018_v32 = vld [vmem:[%s8224_s5 + $0x378] sm:$0xff] }
 0x2b8   :  { %2030 = vmatpush.bf16.msrb.mxu0 %v5991_v30  ;;  %2043 = vmatpush.bf16.msrb.mxu1 %v5999_v31  ;;  %v5979_v30 = vld [vmem:[%s8224_s5 + $0x240] sm:$0xff]  ;;  %v6010_v31 = vld [vmem:[%s8224_s5 + $0x338] sm:$0xff] }
 0x2b9   :  { %v859_v42 = vpack.c.bf16 %v843_v38, %v843_v38  ;;  %v860_v43 = vpack.c.bf16 %v844_v39, %v844_v39  ;;  %v690_v44 = vpop.f32.mrf.mxu2  ;;  %v703_v45 = vpop.f32.mrf.mxu3  ;;  %v6032_v38 = vld [vmem:[%s8224_s5 + $0x3e8] sm:$0xff] }
 0x2ba   :  { %2003 = vmatpush.bf16.msra.mxu2 %v5976_v34  ;;  %2016 = vmatpush.bf16.msra.mxu3 %v5984_v35  ;;  %v691_v46 = vadd.f32 %v690_v44, %v278_v36  ;;  %v704_v47 = vadd.f32 %v703_v45, %v279_v37  ;;  %v6024_v37 = vld [vmem:[%s8224_s5 + $0x3a8] sm:$0xff]  ;;  %v6023_v45 = vld [vmem:[%s8224_s5 + $0x3a0] sm:$0xff] }
 0x2bb   :  { %1983 = vmatmul.bf16.vlgmr.msra.gmra.mxu0 %v859_v42  ;;  %1996 = vmatmul.bf16.vlgmr.msra.gmra.mxu1 %v860_v43  ;;  %v6017_v42 = vld [vmem:[%s8224_s5 + $0x370] sm:$0xff] }
 0x2bc   :  { %v841_v50 = vmax.f32 %v691_v46, 0.0  ;;  %v842_v51 = vmax.f32 %v704_v47, 0.0  ;;  %2031 = vmatpush.bf16.msrb.mxu0 %v5990_v40  ;;  %2044 = vmatpush.bf16.msrb.mxu1 %v5998_v41  ;;  %v718_v52 = vpop.f32.mrf.mxu0  ;;  %v731_v53 = vpop.f32.mrf.mxu1  ;;  %v6009_v41 = vld [vmem:[%s8224_s5 + $0x330] sm:$0xff]  ;;  %v6031_v46 = vld [vmem:[%s8224_s5 + $0x3e0] sm:$0xff]  ;;  %v6008_v47 = vld [vmem:[%s8224_s5 + $0x328] sm:$0xff] }
 0x2bd   :  { %v6030_v52 = vld [vmem:[%s8224_s5 + $0x3d8] sm:$0xff]  ;;  %v6007_v53 = vld [vmem:[%s8224_s5 + $0x320] sm:$0xff] }
 0x2be   :  { %v857_v56 = vpack.c.bf16 %v841_v50, %v841_v50  ;;  %v858_v57 = vpack.c.bf16 %v842_v51, %v842_v51  ;;  %2004 = vmatpush.bf16.msra.mxu2 %v5975_v48  ;;  %2017 = vmatpush.bf16.msra.mxu3 %v5983_v49  ;;  %v6016_v48 = vld [vmem:[%s8224_s5 + $0x368] sm:$0xff]  ;;  %v6022_v51 = vld [vmem:[%s8224_s5 + $0x398] sm:$0xff] }
 0x2c0   :  { %2032 = vmatpush.bf16.msrb.mxu0 %v5989_v54  ;;  %2045 = vmatpush.bf16.msrb.mxu1 %v5997_v55  ;;  %v6015_v54 = vld [vmem:[%s8224_s5 + $0x360] sm:$0xff] }
 0x2c1   :  { %1957 = vmatmul.bf16.vlgmr.msrb.gmra.mxu2 %v857_v56  ;;  %1970 = vmatmul.bf16.vlgmr.msrb.gmra.mxu3 %v858_v57  ;;  %v692_v63 = vpop.f32.mrf.mxu2  ;;  %v705_v0 = vpop.f32.mrf.mxu3  ;;  %v6021_v57 = vld [vmem:[%s8224_s5 + $0x390] sm:$0xff] }
 0x2c2   :  { %2005 = vmatpush.bf16.msra.mxu2 %v5974_v58  ;;  %2018 = vmatpush.bf16.msra.mxu3 %v5982_v59  ;;  %v6029_v58 = vld [vmem:[%s8224_s5 + $0x3d0] sm:$0xff]  ;;  %v288_v59 = vperm.slane %v7129_v60, 6  ;;  %v6014_v63 = vld [vmem:[%s8224_s5 + $0x358] sm:$0xff] }
 0x2c4   :  { %2033 = vmatpush.bf16.msrb.mxu0 %v5988_v61  ;;  %2046 = vmatpush.bf16.msrb.mxu1 %v5996_v62  ;;  %v768_v5 = vpop.f32.mrf.mxu0  ;;  %v781_v6 = vpop.f32.mrf.mxu1  ;;  %v289_v61 = vperm.slane %v7129_v60, 7  ;;  %v6006_v62 = vld [vmem:[%s8224_s5 + $0x318] sm:$0xff] }
 0x2c5   :  { %v769_v9 = vadd.f32 %v768_v5, %v284_v1  ;;  %v782_v21 = vadd.f32 %v781_v6, %v285_v2  ;;  %v6020_v2 = vld [vmem:[%s8224_s5 + $0x388] sm:$0xff]  ;;  %v6005_v6 = vld [vmem:[%s8224_s5 + $0x310] sm:$0xff] }
 0x2c6   :  { %2006 = vmatpush.bf16.msra.mxu2 %v5973_v3  ;;  %2019 = vmatpush.bf16.msra.mxu3 %v5981_v4  ;;  %v6028_v3 = vld [vmem:[%s8224_s5 + $0x3c8] sm:$0xff] }
 0x2c7   :  { %v847_v16 = vmax.f32 %v769_v9, 0.0  ;;  %v848_v26 = vmax.f32 %v782_v21, 0.0  ;;  %v287_v9 = vperm.slane %v7129_v60, 5 }
 0x2c8   :  { %2034 = vmatpush.bf16.msrb.mxu0 %v5987_v7  ;;  %2047 = vmatpush.bf16.msrb.mxu1 %v5995_v8  ;;  %v6013_v7 = vld [vmem:[%s8224_s5 + $0x350] sm:$0xff]  ;;  %v286_v8 = vperm.slane %v7129_v60, 4  ;;  %v6004_v60 = vld [vmem:[%s8224_s5 + $0x308] sm:$0xff] }
 0x2c9   :  { %v863_v18 = vpack.c.bf16 %v847_v16, %v847_v16  ;;  %v864_v19 = vpack.c.bf16 %v848_v26, %v848_v26  ;;  %v742_v20 = vpop.f32.mrf.mxu2  ;;  %v755_v22 = vpop.f32.mrf.mxu3 }
 0x2ca   :  { %2007 = vmatpush.bf16.msra.mxu2 %v5972_v12  ;;  %2020 = vmatpush.bf16.msra.mxu3 %v5980_v13  ;;  %v743_v27 = vadd.f32 %v742_v20, %v282_v14  ;;  %v756_v28 = vadd.f32 %v755_v22, %v283_v15  ;;  %v6027_v12 = vld [vmem:[%s8224_s5 + $0x3c0] sm:$0xff]  ;;  %v6012_v15 = vld [vmem:[%s8224_s5 + $0x348] sm:$0xff] }
 0x2cb   :  { %2035 = vmatmul.bf16.vlgmr.msrb.gmra.mxu0 %v863_v18  ;;  %2048 = vmatmul.bf16.vlgmr.msrb.gmra.mxu1 %v864_v19  ;;  %v6003_v20 = vld [vmem:[%s8224_s5 + $0x300] sm:$0xff] }
 0x2cc   :  { %2079 = vmatpush.bf16.msra.mxu0 %v6026_v10  ;;  %2092 = vmatpush.bf16.msra.mxu1 %v6034_v11  ;;  %v845_v33 = vmax.f32 %v743_v27, 0.0  ;;  %v846_v34 = vmax.f32 %v756_v28, 0.0  ;;  %v770_v35 = vpop.f32.mrf.mxu0  ;;  %v783_v36 = vpop.f32.mrf.mxu1  ;;  %v6019_v11 = vld [vmem:[%s8224_s5 + $0x380] sm:$0xff] }
 0x2cd   :  { %v6011_v22 = vld [vmem:[%s8224_s5 + $0x340] sm:$0xff] }
 0x2ce   :  { %v861_v39 = vpack.c.bf16 %v845_v33, %v845_v33  ;;  %v862_v40 = vpack.c.bf16 %v846_v34, %v846_v34  ;;  %2008 = vmatpush.bf16.msra.mxu2 %v5971_v29  ;;  %2021 = vmatpush.bf16.msra.mxu3 %v5979_v30 }
 0x2d0   :  { %2080 = vmatpush.bf16.msra.mxu0 %v6025_v24  ;;  %2093 = vmatpush.bf16.msra.mxu1 %v6033_v25 }
 0x2d1   :  { %v744_v43 = vpop.f32.mrf.mxu2  ;;  %v757_v44 = vpop.f32.mrf.mxu3  ;;  %2009 = vmatmul.bf16.vlgmr.msra.gmra.mxu2 %v861_v39  ;;  %2022 = vmatmul.bf16.vlgmr.msra.gmra.mxu3 %v862_v40 }
 0x2d2   :  { %2053 = vmatpush.bf16.msrb.mxu2 %v6010_v31  ;;  %2066 = vmatpush.bf16.msrb.mxu3 %v6018_v32 }
 0x2d4   :  { %2081 = vmatpush.bf16.msra.mxu0 %v6024_v37  ;;  %2094 = vmatpush.bf16.msra.mxu1 %v6032_v38  ;;  %v820_v49 = vpop.f32.mrf.mxu0  ;;  %v833_v50 = vpop.f32.mrf.mxu1 }
 0x2d5   :  { %v821_v4 = vadd.f32 %v820_v49, %v288_v59  ;;  %v834_v5 = vadd.f32 %v833_v50, %v289_v61 }
 0x2d6   :  { %2054 = vmatpush.bf16.msrb.mxu2 %v6009_v41  ;;  %2067 = vmatpush.bf16.msrb.mxu3 %v6017_v42  ;;  %v6240_v41 = vld [vmem:[%s8185_s10] ss:$0 sm:$0xff] }
 0x2d7   :  { %v851_v13 = vmax.f32 %v821_v4, 0.0  ;;  %v852_v14 = vmax.f32 %v834_v5, 0.0 }
 0x2d8   :  { %2082 = vmatpush.bf16.msra.mxu0 %v6023_v45  ;;  %2095 = vmatpush.bf16.msra.mxu1 %v6031_v46 }
 0x2d9   :  { %v794_v55 = vpop.f32.mrf.mxu2  ;;  %v807_v56 = vpop.f32.mrf.mxu3  ;;  %v867_v18 = vpack.c.bf16 %v851_v13, %v851_v13  ;;  %v868_v19 = vpack.c.bf16 %v852_v14, %v852_v14 }
 0x2da   :  { %2055 = vmatpush.bf16.msrb.mxu2 %v6008_v47  ;;  %2068 = vmatpush.bf16.msrb.mxu3 %v6016_v48  ;;  %v795_v16 = vadd.f32 %v794_v55, %v286_v8  ;;  %v808_v26 = vadd.f32 %v807_v56, %v287_v9 }
 0x2dc   :  { %2083 = vmatpush.bf16.msra.mxu0 %v6022_v51  ;;  %2096 = vmatpush.bf16.msra.mxu1 %v6030_v52  ;;  %v822_v0 = vpop.f32.mrf.mxu0  ;;  %v835_v1 = vpop.f32.mrf.mxu1  ;;  %v849_v24 = vmax.f32 %v795_v16, 0.0  ;;  %v850_v25 = vmax.f32 %v808_v26, 0.0 }
 0x2de   :  { %2056 = vmatpush.bf16.msrb.mxu2 %v6007_v53  ;;  %2069 = vmatpush.bf16.msrb.mxu3 %v6015_v54  ;;  %v865_v27 = vpack.c.bf16 %v849_v24, %v849_v24  ;;  %v866_v28 = vpack.c.bf16 %v850_v25, %v850_v25  ;;  %v6035_v24 = vld [vmem:[%s8189_s13] sm:$0xff] }
 0x2e0   :  { %2084 = vmatpush.bf16.msra.mxu0 %v6021_v57  ;;  %2097 = vmatpush.bf16.msra.mxu1 %v6029_v58 }
 0x2e1   :  { %v796_v21 = vpop.f32.mrf.mxu2  ;;  %v809_v10 = vpop.f32.mrf.mxu3 }
 0x2e2   :  { %2057 = vmatpush.bf16.msrb.mxu2 %v6006_v62  ;;  %2070 = vmatpush.bf16.msrb.mxu3 %v6014_v63 }
 0x2e4   :  { %2085 = vmatpush.bf16.msra.mxu0 %v6020_v2  ;;  %2098 = vmatpush.bf16.msra.mxu1 %v6028_v3 }
 0x2e6   :  { %2058 = vmatpush.bf16.msrb.mxu2 %v6005_v6  ;;  %2071 = vmatpush.bf16.msrb.mxu3 %v6013_v7 }
 0x2e8   :  { %2086 = vmatpush.bf16.msra.mxu0 %v6019_v11  ;;  %2099 = vmatpush.bf16.msra.mxu1 %v6027_v12 }
 0x2ea   :  { %2059 = vmatpush.bf16.msrb.mxu2 %v6004_v60  ;;  %2072 = vmatpush.bf16.msrb.mxu3 %v6012_v15 }
 0x2eb   :  { %2087 = vmatmul.bf16.vlgmr.msra.gmra.mxu0 %v867_v18  ;;  %2100 = vmatmul.bf16.vlgmr.msra.gmra.mxu1 %v868_v19 }
 0x2ee   :  { %2060 = vmatpush.bf16.msrb.mxu2 %v6003_v20  ;;  %2073 = vmatpush.bf16.msrb.mxu3 %v6011_v22  ;;  %v6038_v20 = vld [vmem:[%s8189_s13 + $0x18] sm:$0xff]  ;;  %v6036_v22 = vld [vmem:[%s8189_s13 + $0x8] sm:$0xff] }
 0x2f1   :  { %2061 = vmatmul.bf16.vlgmr.msrb.gmra.mxu2 %v865_v27  ;;  %2074 = vmatmul.bf16.vlgmr.msrb.gmra.mxu3 %v866_v28 }
 0x2f2   :  { %2182 = vmatpush.bf16.msra.mxu2 %v6038_v20  ;;  %v6056_v20 = vld [vmem:[%s8192_s17 + $0x8c] sm:$0xf] }
 0x328   :  { %v1932_v29 = vpop.f32.mrf.mxu0  ;;  %v1945_v30 = vpop.f32.mrf.mxu1 }
 0x330   :  { %v1934_v31 = vpop.f32.mrf.mxu0  ;;  %v1947_v32 = vpop.f32.mrf.mxu1 }
 0x334   :  { %v1906_v33 = vpop.f32.mrf.mxu2  ;;  %v1919_v34 = vpop.f32.mrf.mxu3 }
 0x335   :  { %v1907_v44 = vadd.f32 %v6240_v41, %v1906_v33 }
 0x337   :  { %v1920_v47 = vadd.f32 %v1919_v34, %v1907_v44 }
 0x338   :  { %v1984_v35 = vpop.f32.mrf.mxu0  ;;  %v1997_v36 = vpop.f32.mrf.mxu1 }
 0x339   :  { %v1933_v50 = vadd.f32 %v1932_v29, %v1920_v47 }
 0x33b   :  { %v1946_v53 = vadd.f32 %v1945_v30, %v1933_v50 }
 0x33c   :  { %v1908_v37 = vpop.f32.mrf.mxu2  ;;  %v1921_v38 = vpop.f32.mrf.mxu3 }
 0x33d   :  { %v6242_v38 = vld [vmem:[%s8187_s12] ss:$0 sm:$0xff] }
 0x340   :  { %v1986_v39 = vpop.f32.mrf.mxu0  ;;  %v1999_v40 = vpop.f32.mrf.mxu1 }
 0x344   :  { %v1958_v42 = vpop.f32.mrf.mxu2  ;;  %v1971_v43 = vpop.f32.mrf.mxu3 }
 0x345   :  { %v1959_v56 = vadd.f32 %v1958_v42, %v1946_v53  ;;  %v6243_v42 = vld [vmem:[%s8188_s14] ss:$0 sm:$0xff] }
 0x346   :  { %v6095_v53 = vld [vmem:[%s8192_s17 + $0x1bc] sm:$0xf0] }
 0x347   :  { %v1972_v57 = vadd.f32 %v1971_v43, %v1959_v56  ;;  %v5233_v56 = vld [vmem:[%s8192_s17 + $0x1c0] sm:$0xf0] }
 0x348   :  { %v2036_v45 = vpop.f32.mrf.mxu0  ;;  %v2049_v46 = vpop.f32.mrf.mxu1 }
 0x349   :  { %v1985_v61 = vadd.f32 %v1984_v35, %v1972_v57  ;;  %v6241_v35 = vld [vmem:[%s8186_s11] ss:$0 sm:$0xff]  ;;  %v5239_v57 = vld [vmem:[%s8192_s17 + $0x188] sm:$0xf] }
 0x34b   :  { %v1998_v62 = vadd.f32 %v1997_v36, %v1985_v61 }
 0x34c   :  { %v1960_v48 = vpop.f32.mrf.mxu2  ;;  %v1973_v49 = vpop.f32.mrf.mxu3 }
 0x350   :  { %v2038_v51 = vpop.f32.mrf.mxu0  ;;  %v2051_v52 = vpop.f32.mrf.mxu1 }
 0x351   :  { %v5231_v52 = vld [vmem:[%s8192_s17 + $0x180] sm:$0xf] }
 0x354   :  { %v2010_v54 = vpop.f32.mrf.mxu2  ;;  %v2023_v55 = vpop.f32.mrf.mxu3 }
 0x355   :  { %v2011_v63 = vadd.f32 %v2010_v54, %v1998_v62  ;;  %v6087_v54 = vld [vmem:[%s8192_s17 + $0x184] sm:$0xf]  ;;  %v6088_v62 = vld [vmem:[%s8192_s17 + $0x18c] sm:$0xf] }
 0x357   :  { %v2024_v2 = vadd.f32 %v2023_v55, %v2011_v63  ;;  %v5232_v55 = vor.u32 %v6095_v53, %v5231_v52  ;;  %v5241_v63 = vld [vmem:[%s8192_s17 + $0x1c8] sm:$0xf0]  ;;  %v6081_v53 = vld [vmem:[%s8192_s17 + $0x14c] sm:$0xf0] }
 0x359   :  { %v2037_v3 = vadd.f32 %v2036_v45, %v2024_v2  ;;  %2651 = vmatpush.bf16.msra.mxu3 %v5232_v55  ;;  %v6079_v2 = vld [vmem:[%s8192_s17 + $0x13c] sm:$0xf0]  ;;  %v5185_v55 = vld [vmem:[%s8192_s17 + $0x150] sm:$0xf0] }
 0x35b   :  { %v2050_v6 = vadd.f32 %v2049_v46, %v2037_v3  ;;  %v6071_v3 = vld [vmem:[%s8192_s17 + $0x104] sm:$0xf] }
 0x35c   :  { %v2012_v58 = vpop.f32.mrf.mxu2  ;;  %v2025_v59 = vpop.f32.mrf.mxu3 }
 0x35d   :  { %v6096_v58 = vld [vmem:[%s8192_s17 + $0x1c4] sm:$0xf0]  ;;  %v5236_v59 = vor.u32 %v6087_v54, %v5233_v56  ;;  %v6073_v54 = vld [vmem:[%s8192_s17 + $0x114] sm:$0xf] }
 0x35e   :  { %v5240_v61 = vor.u32 %v6096_v58, %v5239_v57  ;;  %v5188_v57 = vor.u32 %v6073_v54, %v5185_v55  ;;  %v5191_v58 = vld [vmem:[%s8192_s17 + $0x118] sm:$0xf]  ;;  %v5201_v54 = vld [vmem:[%s8192_s17 + $0x160] sm:$0xf0]  ;;  %v5207_v55 = vld [vmem:[%s8192_s17 + $0x128] sm:$0xf] }
 0x35f   :  { %2664 = vmatpush.bf16.msrb.mxu0 %v5236_v59  ;;  %v6082_v59 = vld [vmem:[%s8192_s17 + $0x154] sm:$0xf0] }
 0x360   :  { %2677 = vmatpush.bf16.msrb.mxu1 %v5240_v61  ;;  %v6074_v61 = vld [vmem:[%s8192_s17 + $0x11c] sm:$0xf] }
 0x368   :  { %v2088_v0 = vpop.f32.mrf.mxu0  ;;  %v2101_v1 = vpop.f32.mrf.mxu1 }
 0x370   :  { %v2090_v4 = vpop.f32.mrf.mxu0  ;;  %v2103_v5 = vpop.f32.mrf.mxu1 }
 0x371   :  { %v5169_v5 = vld [vmem:[%s8192_s17 + $0x140] sm:$0xf0] }
 0x374   :  { %v2062_v7 = vpop.f32.mrf.mxu2  ;;  %v2075_v8 = vpop.f32.mrf.mxu3 }
 0x375   :  { %v2063_v9 = vadd.f32 %v2062_v7, %v2050_v6  ;;  %v5175_v6 = vld [vmem:[%s8192_s17 + $0x108] sm:$0xf] }
 0x376   :  { %v6080_v7 = vld [vmem:[%s8192_s17 + $0x144] sm:$0xf0] }
 0x377   :  { %v2076_v21 = vadd.f32 %v2075_v8, %v2063_v9  ;;  %v5172_v8 = vor.u32 %v6071_v3, %v5169_v5  ;;  %v5176_v9 = vor.u32 %v6080_v7, %v5175_v6  ;;  %v6065_v3 = vld [vmem:[%s8192_s17 + $0xcc] sm:$0xf0]  ;;  %v5121_v5 = vld [vmem:[%s8192_s17 + $0xd0] sm:$0xf0]  ;;  %v5127_v7 = vld [vmem:[%s8192_s17 + $0x98] sm:$0xf] }
 0x379   :  { %v2089_v10 = vadd.f32 %v2088_v0, %v2076_v21  ;;  %v5244_v0 = vor.u32 %v6088_v62, %v5241_v63  ;;  %v6072_v21 = vld [vmem:[%s8192_s17 + $0x10c] sm:$0xf]  ;;  %2665 = vmatpush.bf16.msrb.mxu0 %v5172_v8  ;;  %2678 = vmatpush.bf16.msrb.mxu1 %v5176_v9  ;;  %v5192_v63 = vor.u32 %v6082_v59, %v5191_v58  ;;  %v6066_v8 = vld [vmem:[%s8192_s17 + $0xd4] sm:$0xf0]  ;;  %v6058_v9 = vld [vmem:[%s8192_s17 + $0x9c] sm:$0xf] }
 0x37a   :  { %v5209_v58 = vld [vmem:[%s8192_s17 + $0x168] sm:$0xf0] }
 0x37b   :  { %v2102_v11 = vadd.f32 %v2101_v1, %v2089_v10  ;;  %v5167_v1 = vld [vmem:[%s8192_s17 + $0x100] sm:$0xf]  ;;  %v5177_v10 = vld [vmem:[%s8192_s17 + $0x148] sm:$0xf0] }
 0x37c   :  { %v2064_v12 = vpop.f32.mrf.mxu2  ;;  %v2077_v13 = vpop.f32.mrf.mxu3  ;;  %v5168_v4 = vor.u32 %v6079_v2, %v5167_v1  ;;  %v5119_v1 = vld [vmem:[%s8192_s17 + $0x90] sm:$0xf] }
 0x37d   :  { %v2105_v14 = vadd.f32 %v2102_v11, %v6640_v17  ;;  %v6037_v17 = vld [vmem:[%s8189_s13 + $0x10] sm:$0xff]  ;;  %v5180_v11 = vor.u32 %v6072_v21, %v5177_v10  ;;  %v5103_v12 = vld [vmem:[%s8192_s17 + $0x80] sm:$0xf]  ;;  %v5120_v6 = vor.u32 %v6065_v3, %v5119_v1  ;;  %v5128_v10 = vor.u32 %v6066_v8, %v5127_v7  ;;  %v5137_v3 = vld [vmem:[%s8192_s17 + $0xe0] sm:$0xf0] }
 0x37e   :  { %2183 = vmatpush.bf16.msra.mxu2 %v6037_v17  ;;  %2652 = vmatpush.bf16.msra.mxu3 %v5168_v4  ;;  %v6063_v13 = vld [vmem:[%s8192_s17 + $0xbc] sm:$0xf0]  ;;  %v5113_v17 = vld [vmem:[%s8192_s17 + $0xc8] sm:$0xf0]  ;;  %v6057_v4 = vld [vmem:[%s8192_s17 + $0x94] sm:$0xf] }
 0x37f   :  { %v2106_v60 = vsel %vm149_vm1, %v2105_v14, 0.0  ;;  %v5124_v21 = vor.u32 %v6057_v4, %v5121_v5  ;;  %v5143_v4 = vld [vmem:[%s8192_s17 + $0xa8] sm:$0xf]  ;;  %v5145_v7 = vld [vmem:[%s8192_s17 + $0xe8] sm:$0xf0] }
 0x380   :  { %2107 = vadd.xlane.f32.xlu1 %v2106_v60  ;;  %v5104_v60 = vor.u32 %v6063_v13, %v5103_v12  ;;  %v5055_v12 = vld [vmem:[%s8192_s17 + $0x10] sm:$0xf]  ;;  %v6068_v5 = vld [vmem:[%s8192_s17 + $0xe4] sm:$0xf0] }
 0x381   :  { %v6049_v13 = vld [vmem:[%s8192_s17 + $0x4c] sm:$0xf0] }
 0x382   :  { %2184 = vmatpush.bf16.msra.mxu2 %v6036_v22  ;;  %2653 = vmatpush.bf16.msra.mxu3 %v5104_v60  ;;  %v5116_v22 = vor.u32 %v6056_v20, %v5113_v17  ;;  %v6041_v60 = vld [vmem:[%s8192_s17 + $0x14] sm:$0xf]  ;;  %v5056_v20 = vor.u32 %v6049_v13, %v5055_v12  ;;  %v6043_v13 = vld [vmem:[%s8192_s17 + $0x24] sm:$0xf] }
 0x386   :  { %2185 = vmatpush.bf16.msra.mxu2 %v6035_v24  ;;  %v5039_v24 = vld [vmem:[%s8192_s17] sm:$0xf] }
 0x38a   :  { %2690 = vmatpush.bf16.msrb.mxu2 %v5244_v0  ;;  %v5193_v0 = vld [vmem:[%s8192_s17 + $0x158] sm:$0xf0] }
 0x38b   :  { %v5196_v2 = vor.u32 %v6074_v61, %v5193_v0 }
 0x38e   :  { %2691 = vmatpush.bf16.msrb.mxu2 %v5180_v11  ;;  %v5129_v11 = vld [vmem:[%s8192_s17 + $0xd8] sm:$0xf0] }
 0x392   :  { %2692 = vmatpush.bf16.msrb.mxu2 %v5116_v22 }
 0x3f3   :  { %v2108_v15 = vpop.xlane.xlu1 %2107 }
 0x3f4   :  { %v2109_v16 = vmul.f32 %v2108_v15, %v6417_v23  ;;  %v5105_v15 = vld [vmem:[%s8192_s17 + $0xc0] sm:$0xf0] }
 0x3f6   :  { %v2110_v26 = vsub.f32 %v2105_v14, %v2109_v16  ;;  %v6055_v14 = vld [vmem:[%s8192_s17 + $0x84] sm:$0xf]  ;;  %v5111_v16 = vld [vmem:[%s8192_s17 + $0x88] sm:$0xf] }
 0x3f8   :  { %v2111_v18 = vmul.f32 %v2110_v26, %v2110_v26 }
 0x3fa   :  { %v2112_v19 = vsel %vm149_vm1, %v2111_v18, 0.0  ;;  %v5108_v18 = vor.u32 %v6055_v14, %v5105_v15  ;;  %v5132_v14 = vor.u32 %v6058_v9, %v5129_v11  ;;  %v5057_v15 = vld [vmem:[%s8192_s17 + $0x50] sm:$0xf0]  ;;  %v5144_v11 = vor.u32 %v6068_v5, %v5143_v4  ;;  %v6054_v4 = vld [vmem:[%s8192_s17 + $0x74] sm:$0xf0] }
 0x3fb   :  { %2113 = vadd.xlane.f32.xlu1 %v2112_v19  ;;  %v5060_v17 = vor.u32 %v6041_v60, %v5057_v15  ;;  %v5079_v60 = vld [vmem:[%s8192_s17 + $0x28] sm:$0xf]  ;;  %v6046_v5 = vld [vmem:[%s8192_s17 + $0x3c] sm:$0xf] }
 0x3fc   :  { %2666 = vmatpush.bf16.msrb.mxu0 %v5108_v18  ;;  %v6042_v18 = vld [vmem:[%s8192_s17 + $0x1c] sm:$0xf]  ;;  %v6052_v15 = vld [vmem:[%s8192_s17 + $0x64] sm:$0xf0] }
 0x46e   :  { %v2114_v25 = vpop.xlane.xlu1 %2113 }
 0x46f   :  { %v2115_v27 = vmul.f32 %v2114_v25, %v6417_v23  ;;  %v6047_v25 = vld [vmem:[%s8192_s17 + $0x3c] sm:$0xf0] }
 0x471   :  { %v2116_v28 = vadd.f32 1e-05, %v2115_v27  ;;  %v6039_v27 = vld [vmem:[%s8192_s17 + $0x4] sm:$0xf] }
 0x473   :  { %6254 = vrsqrt.f32 %v2116_v28  ;;  %vm2123_vm7 = vweird.f32 %v2116_v28 }
 0x479   :  { %v6255_v29 = vpop.eup %6254 }
 0x47a   :  { %v2118_v30 = vmul.f32 %v6255_v29, %v2116_v28  ;;  %vm2124_vm6 = vweird.f32 %v6255_v29  ;;  %v5040_v28 = vor.u32 %v6047_v25, %v5039_v24 }
 0x47b   :  { %vm2125_vm8 = vmor %vm2123_vm7, %vm2124_vm6 }
 0x47c   :  { %v2119_v31 = vmul.f32 %v6255_v29, %v2118_v30  ;;  %v5047_v30 = vld [vmem:[%s8192_s17 + $0x8] sm:$0xf]  ;;  %2654 = vmatpush.bf16.msra.mxu3 %v5040_v28 }
 0x47e   :  { %v2120_v32 = vmul.f32 0.5, %v2119_v31  ;;  %v6048_v31 = vld [vmem:[%s8192_s17 + $0x44] sm:$0xf0] }
 0x480   :  { %v2121_v33 = vsub.f32 1.5, %v2120_v32 }
 0x482   :  { %v2122_v34 = vmul.f32 %v6255_v29, %v2121_v33  ;;  %v5048_v33 = vor.u32 %v6048_v31, %v5047_v30 }
 0x484   :  { %v2126_v36 = vsel %vm2125_vm8, %v6255_v29, %v2122_v34  ;;  %v5041_v29 = vld [vmem:[%s8192_s17 + $0x40] sm:$0xf0]  ;;  %v6040_v34 = vld [vmem:[%s8192_s17 + $0xc] sm:$0xf] }
 0x485   :  { %v2127_v37 = vmul.f32 %v2126_v36, %v2110_v26  ;;  %v6064_v26 = vld [vmem:[%s8192_s17 + $0xc4] sm:$0xf0]  ;;  %v5044_v32 = vor.u32 %v6039_v27, %v5041_v29 }
 0x486   :  { %v5112_v19 = vor.u32 %v6064_v26, %v5111_v16  ;;  %v5063_v16 = vld [vmem:[%s8192_s17 + $0x18] sm:$0xf] }
 0x487   :  { %v2132_v39 = vmul.f32 %v6241_v35, %v2127_v37  ;;  %v5049_v35 = vld [vmem:[%s8192_s17 + $0x48] sm:$0xf0]  ;;  %2667 = vmatpush.bf16.msrb.mxu0 %v5044_v32  ;;  %v5247_v37 = vld [vmem:[%s8192_s17 + $0x190] sm:$0xf]  ;;  %v6050_v26 = vld [vmem:[%s8192_s17 + $0x54] sm:$0xf0] }
 0x488   :  { %2679 = vmatpush.bf16.msrb.mxu1 %v5112_v19  ;;  %v5052_v36 = vor.u32 %v6040_v34, %v5049_v35  ;;  %v5065_v19 = vld [vmem:[%s8192_s17 + $0x58] sm:$0xf0]  ;;  %v5064_v22 = vor.u32 %v6050_v26, %v5063_v16  ;;  %v6244_v32 = vld [vmem:[%s8190_s15] ss:$0 sm:$0xff]  ;;  %v6044_v16 = vld [vmem:[%s8192_s17 + $0x2c] sm:$0xf] }
 0x489   :  { %v2137_v40 = vadd.f32 %v6242_v38, %v2132_v39  ;;  %v6097_v38 = vld [vmem:[%s8192_s17 + $0x1cc] sm:$0xf0]  ;;  %v6089_v39 = vld [vmem:[%s8192_s17 + $0x194] sm:$0xf]  ;;  %v5068_v25 = vor.u32 %v6042_v18, %v5065_v19  ;;  %v6245_v34 = vld [vmem:[%s8191_s16] ss:$0 sm:$0xff] }
 0x48a   :  { %2693 = vmatpush.bf16.msrb.mxu2 %v5052_v36  ;;  %v5081_v26 = vld [vmem:[%s8192_s17 + $0x68] sm:$0xf0]  ;;  %s8226_s15 = sld [smem:[#allocation12_spill]] }
 0x48b   :  { %v2138_v41 = vpack.c.bf16 %v2137_v40, %v2137_v40  ;;  %v5248_v40 = vor.u32 %v6097_v38, %v5247_v37  ;;  %v5263_v37 = vld [vmem:[%s8192_s17 + $0x1a0] sm:$0xf] }
 0x48c   :  { %2680 = vmatpush.bf16.msrb.mxu1 %v5048_v33  ;;  %v6099_v38 = vld [vmem:[%s8192_s17 + $0x1dc] sm:$0xf0] }
 0x48d   :  { %5036 = vmatmul.msk.bf16.vlgmr.msra.gmra.mxu2 %vm149_vm1, %v2138_v41  ;;  %v5249_v41 = vld [vmem:[%s8192_s17 + $0x1d0] sm:$0xf0]  ;;  %2703 = vmatpush.bf16.msrb.mxu3 %v5248_v40  ;;  %v5265_v40 = vld [vmem:[%s8192_s17 + $0x1e0] sm:$0xf0] }
 0x510   :  { %v2187_v43 = vpop.f32.mrf.mxu2 }
 0x511   :  { %v2188_v44 = vadd.f32 %v6243_v42, %v2187_v43  ;;  %v5255_v42 = vld [vmem:[%s8192_s17 + $0x198] sm:$0xf] }
 0x512   :  { %v6098_v43 = vld [vmem:[%s8192_s17 + $0x1d4] sm:$0xf0] }
 0x513   :  { %v2191_v45 = vsel %vm149_vm1, %v2188_v44, 0.0 }
 0x514   :  { %2192 = vadd.xlane.f32.xlu2 %v2191_v45  ;;  %v5252_v45 = vor.u32 %v6089_v39, %v5249_v41  ;;  %v6091_v39 = vld [vmem:[%s8192_s17 + $0x1a4] sm:$0xf] }
 0x516   :  { %2716 = vmatpush.bf16.msra.mxu0 %v5252_v45 }
 0x518   :  { %v2189_v46 = vpop.f32.mrf.mxu2 }
 0x519   :  { %v5256_v46 = vor.u32 %v6098_v43, %v5255_v42  ;;  %v6100_v42 = vld [vmem:[%s8192_s17 + $0x1e4] sm:$0xf0]  ;;  %v6092_v43 = vld [vmem:[%s8192_s17 + $0x1ac] sm:$0xf] }
 0x51a   :  { %2717 = vmatpush.bf16.msra.mxu0 %v5188_v57  ;;  %v6076_v57 = vld [vmem:[%s8192_s17 + $0x12c] sm:$0xf] }
 0x51b   :  { %2729 = vmatpush.bf16.msra.mxu1 %v5256_v46  ;;  %v5264_v46 = vor.u32 %v6099_v38, %v5263_v37  ;;  %v5212_v1 = vor.u32 %v6076_v57, %v5209_v58  ;;  %v6077_v38 = vld [vmem:[%s8192_s17 + $0x134] sm:$0xf]  ;;  %v5161_v57 = vld [vmem:[%s8192_s17 + $0xf8] sm:$0xf0] }
 0x51e   :  { %2718 = vmatpush.bf16.msra.mxu0 %v5124_v21  ;;  %v5071_v21 = vld [vmem:[%s8192_s17 + $0x20] sm:$0xf] }
 0x51f   :  { %2730 = vmatpush.bf16.msra.mxu1 %v5192_v63  ;;  %v6067_v63 = vld [vmem:[%s8192_s17 + $0xdc] sm:$0xf0] }
 0x522   :  { %2719 = vmatpush.bf16.msra.mxu0 %v5060_v17  ;;  %v6101_v17 = vld [vmem:[%s8192_s17 + $0x1ec] sm:$0xf0] }
 0x523   :  { %2731 = vmatpush.bf16.msra.mxu1 %v5128_v10  ;;  %v6051_v10 = vld [vmem:[%s8192_s17 + $0x5c] sm:$0xf0] }
 0x524   :  { %v5072_v18 = vor.u32 %v6051_v10, %v5071_v21  ;;  %v6118_v10 = vld [vmem:[%s8193_s19 + $0x78] sm:$0xff] }
 0x527   :  { %2732 = vmatpush.bf16.msra.mxu1 %v5064_v22  ;;  %v5080_v22 = vor.u32 %v6052_v15, %v5079_v60  ;;  %v6125_v60 = vld [vmem:[%s8193_s19 + $0xb0] sm:$0xff] }
 0x528   :  { %v6109_v15 = vld [vmem:[%s8193_s19 + $0x30] sm:$0xff] }
 0x587   :  { %v2193_v47 = vpop.xlane.xlu2 %2192 }
 0x588   :  { %v2194_v48 = vmul.f32 %v2193_v47, %v6417_v23  ;;  %v6090_v47 = vld [vmem:[%s8192_s17 + $0x19c] sm:$0xf] }
 0x58a   :  { %v7297_v49 = vsub.f32 %v2188_v44, %v2194_v48  ;;  %v5257_v48 = vld [vmem:[%s8192_s17 + $0x1d8] sm:$0xf0] }
 0x58b   :  { %v5260_v52 = vor.u32 %v6090_v47, %v5257_v48  ;;  %v5268_v47 = vor.u32 %v6091_v39, %v5265_v40  ;;  %v5199_v48 = vld [vmem:[%s8192_s17 + $0x120] sm:$0xf]  ;;  %v5217_v39 = vld [vmem:[%s8192_s17 + $0x170] sm:$0xf0]  ;;  %v5223_v40 = vld [vmem:[%s8192_s17 + $0x138] sm:$0xf] }
 0x58c   :  { %v2196_v50 = vmul.f32 %v7297_v49, %v7297_v49 }
 0x58d   :  { %2742 = vmatpush.bf16.msra.mxu2 %v5260_v52 }
 0x58e   :  { %v2197_v51 = vsel %vm149_vm1, %v2196_v50, 0.0  ;;  %v5183_v50 = vld [vmem:[%s8192_s17 + $0x110] sm:$0xf] }
 0x58f   :  { %2198 = vadd.xlane.f32.xlu2 %v2197_v51  ;;  %v5184_v56 = vor.u32 %v6081_v53, %v5183_v50  ;;  %v6083_v50 = vld [vmem:[%s8192_s17 + $0x15c] sm:$0xf0]  ;;  %v6075_v53 = vld [vmem:[%s8192_s17 + $0x124] sm:$0xf] }
 0x590   :  { %v5200_v59 = vor.u32 %v6083_v50, %v5199_v48  ;;  %v5204_v61 = vor.u32 %v6075_v53, %v5201_v54  ;;  %v6069_v48 = vld [vmem:[%s8192_s17 + $0xec] sm:$0xf0]  ;;  %v5153_v53 = vld [vmem:[%s8192_s17 + $0xf0] sm:$0xf0]  ;;  %v5159_v54 = vld [vmem:[%s8192_s17 + $0xb8] sm:$0xf] }
 0x591   :  { %2704 = vmatpush.bf16.msrb.mxu3 %v5184_v56  ;;  %2743 = vmatpush.bf16.msra.mxu2 %v5196_v2  ;;  %v6084_v56 = vld [vmem:[%s8192_s17 + $0x164] sm:$0xf0]  ;;  %v6059_v2 = vld [vmem:[%s8192_s17 + $0xa4] sm:$0xf] }
 0x592   :  { %v5208_v0 = vor.u32 %v6084_v56, %v5207_v55  ;;  %v5140_v9 = vor.u32 %v6059_v2, %v5137_v3  ;;  %v6070_v55 = vld [vmem:[%s8192_s17 + $0xf4] sm:$0xf0]  ;;  %v6062_v56 = vld [vmem:[%s8192_s17 + $0xbc] sm:$0xf]  ;;  %v5089_v2 = vld [vmem:[%s8192_s17 + $0x70] sm:$0xf0] }
 0x593   :  { %v5095_v3 = vld [vmem:[%s8192_s17 + $0x38] sm:$0xf] }
 0x595   :  { %2705 = vmatpush.bf16.msrb.mxu3 %v5120_v6  ;;  %2744 = vmatpush.bf16.msra.mxu2 %v5132_v14  ;;  %v6060_v6 = vld [vmem:[%s8192_s17 + $0xac] sm:$0xf]  ;;  %v5073_v14 = vld [vmem:[%s8192_s17 + $0x60] sm:$0xf0] }
 0x596   :  { %v5148_v12 = vor.u32 %v6060_v6, %v5145_v7  ;;  %v5076_v19 = vor.u32 %v6043_v13, %v5073_v14  ;;  %v5097_v6 = vld [vmem:[%s8192_s17 + $0x78] sm:$0xf0]  ;;  %v6117_v14 = vld [vmem:[%s8193_s19 + $0x70] sm:$0xff] }
 0x597   :  { %v5100_v21 = vor.u32 %v6046_v5, %v5097_v6  ;;  %v6134_v13 = vld [vmem:[%s8193_s19 + $0xf8] sm:$0xff]  ;;  %v6137_v5 = vld [vmem:[%s8193_s19 + $0x110] sm:$0xff] }
 0x598   :  { %v6161_v6 = vld [vmem:[%s8193_s19 + $0x1d0] sm:$0xff] }
 0x599   :  { %2706 = vmatpush.bf16.msrb.mxu3 %v5056_v20  ;;  %2745 = vmatpush.bf16.msra.mxu2 %v5068_v25  ;;  %v5279_v20 = vld [vmem:[%s8192_s17 + $0x1b0] sm:$0xf]  ;;  %v6093_v25 = vld [vmem:[%s8192_s17 + $0x1b4] sm:$0xf] }
 0x602   :  { %v2199_v44 = vpop.xlane.xlu2 %2198 }
 0x603   :  { %v2200_v51 = vmul.f32 %v2199_v44, %v6417_v23  ;;  %v5273_v44 = vld [vmem:[%s8192_s17 + $0x1e8] sm:$0xf0] }
 0x604   :  { %v5276_v52 = vor.u32 %v6092_v43, %v5273_v44  ;;  %v5225_v43 = vld [vmem:[%s8192_s17 + $0x178] sm:$0xf0] }
 0x605   :  { %v2201_v62 = vadd.f32 1e-05, %v2200_v51 }
 0x607   :  { %6256 = vrsqrt.f32 %v2201_v62  ;;  %vm2208_vm10 = vweird.f32 %v2201_v62 }
 0x60d   :  { %v6257_v24 = vpop.eup %6256 }
 0x60e   :  { %v2203_v27 = vmul.f32 %v6257_v24, %v2201_v62  ;;  %vm2209_vm9 = vweird.f32 %v6257_v24  ;;  %v5135_v62 = vld [vmem:[%s8192_s17 + $0xa0] sm:$0xf] }
 0x60f   :  { %vm2210_vm11 = vmor %vm2208_vm10, %vm2209_vm9  ;;  %v5136_v8 = vor.u32 %v6067_v63, %v5135_v62  ;;  %v6053_v62 = vld [vmem:[%s8192_s17 + $0x6c] sm:$0xf0]  ;;  %v5160_v63 = vor.u32 %v6070_v55, %v5159_v54  ;;  %v6140_v54 = vld [vmem:[%s8193_s19 + $0x128] sm:$0xff] }
 0x610   :  { %v2204_v28 = vmul.f32 %v6257_v24, %v2203_v27  ;;  %v5281_v27 = vld [vmem:[%s8192_s17 + $0x1f0] sm:$0xf0]  ;;  %v6164_v55 = vld [vmem:[%s8193_s19 + $0x1e8] sm:$0xff] }
 0x612   :  { %v2205_v29 = vmul.f32 0.5, %v2204_v28  ;;  %v5287_v28 = vld [vmem:[%s8192_s17 + $0x1b8] sm:$0xf] }
 0x614   :  { %v2206_v30 = vsub.f32 1.5, %v2205_v29  ;;  %v6102_v29 = vld [vmem:[%s8192_s17 + $0x1f4] sm:$0xf0] }
 0x616   :  { %v2207_v31 = vmul.f32 %v6257_v24, %v2206_v30  ;;  %v6094_v30 = vld [vmem:[%s8192_s17 + $0x1bc] sm:$0xf] }
 0x618   :  { %v2211_v33 = vsel %vm2210_vm11, %v6257_v24, %v2207_v31  ;;  %v5084_v24 = vor.u32 %v6044_v16, %v5081_v26  ;;  %v5289_v31 = vld [vmem:[%s8192_s17 + $0x1f8] sm:$0xf0]  ;;  %v6133_v16 = vld [vmem:[%s8193_s19 + $0xf0] sm:$0xff]  ;;  %v6116_v26 = vld [vmem:[%s8193_s19 + $0x68] sm:$0xff] }
 0x619   :  { %v2212_v35 = vmul.f32 %v2211_v33, %v7297_v49  ;;  %v5271_v49 = vld [vmem:[%s8192_s17 + $0x1a8] sm:$0xf]  ;;  %v5284_v33 = vor.u32 %v6093_v25, %v5281_v27  ;;  %v5292_v37 = vor.u32 %v6094_v30, %v5289_v31  ;;  %v6131_v25 = vld [vmem:[%s8193_s19 + $0xe0] sm:$0xff]  ;;  %v6114_v27 = vld [vmem:[%s8193_s19 + $0x58] sm:$0xff] }
 0x61a   :  { %v5272_v51 = vor.u32 %v6100_v42, %v5271_v49  ;;  %v6086_v49 = vld [vmem:[%s8192_s17 + $0x174] sm:$0xf0]  ;;  %v6078_v42 = vld [vmem:[%s8192_s17 + $0x13c] sm:$0xf]  ;;  %v6113_v31 = vld [vmem:[%s8193_s19 + $0x50] sm:$0xff] }
 0x61b   :  { %v2217_v36 = vmul.f32 %v6244_v32, %v2212_v35  ;;  %v5280_v32 = vor.u32 %v6101_v17, %v5279_v20  ;;  %v6085_v35 = vld [vmem:[%s8192_s17 + $0x16c] sm:$0xf0]  ;;  %v5224_v50 = vor.u32 %v6086_v49, %v5223_v40  ;;  %v6132_v20 = vld [vmem:[%s8193_s19 + $0xe8] sm:$0xff]  ;;  %v6115_v17 = vld [vmem:[%s8193_s19 + $0x60] sm:$0xff] }
 0x61c   :  { %v6130_v30 = vld [vmem:[%s8193_s19 + $0xd8] sm:$0xff] }
 0x61d   :  { %v7517_v41 = vadd.f32 %v6245_v34, %v2217_v36  ;;  %v5215_v34 = vld [vmem:[%s8192_s17 + $0x130] sm:$0xf]  ;;  %v5288_v36 = vor.u32 %v6102_v29, %v5287_v28  ;;  %v6122_v28 = vld [vmem:[%s8193_s19 + $0x98] sm:$0xff] }
 0x61e   :  { %v5216_v44 = vor.u32 %v6085_v35, %v5215_v34  ;;  %v6106_v29 = vld [vmem:[%s8193_s19 + $0x18] sm:$0xff]  ;;  %v6112_v34 = vld [vmem:[%s8193_s19 + $0x48] sm:$0xff] }
 0x61f   :  { %v7530_v45 = vpack.c.bf16 %v7517_v41, %v7517_v41  ;;  %v6120_v35 = vld [vmem:[%s8193_s19 + $0x88] sm:$0xff]  ;;  %v6150_v40 = vld [vmem:[%s8193_s19 + $0x178] sm:$0xff] }
 0x620   :  { %v6158_v49 = vld [vmem:[%s8193_s19 + $0x1b8] sm:$0xff] }
 0x621   :  { %5293 = vmatmul.msk.bf16.vlgmr.msra.gmra.mxu3 %vm149_vm1, %v7530_v45  ;;  %5294 = vmatmul.msk.bf16.vlgmr.msrb.gmra.mxu0 %vm149_vm1, %v7530_v45 }
 0x622   :  { %5295 = vmatmul.msk.bf16.vlgmr.msrb.gmra.mxu1 %vm149_vm1, %v7530_v45  ;;  %5296 = vmatmul.msk.bf16.vlgmr.msrb.gmra.mxu2 %vm149_vm1, %v7530_v45 }
 0x623   :  { %2755 = vmatpush.bf16.msra.mxu3 %v5264_v46  ;;  %2768 = vmatpush.bf16.msrb.mxu0 %v5268_v47  ;;  %v5220_v46 = vor.u32 %v6077_v38, %v5217_v39  ;;  %v5151_v47 = vld [vmem:[%s8192_s17 + $0xb0] sm:$0xf]  ;;  %v6111_v38 = vld [vmem:[%s8193_s19 + $0x40] sm:$0xff] }
 0x624   :  { %2781 = vmatpush.bf16.msrb.mxu1 %v5272_v51  ;;  %2794 = vmatpush.bf16.msrb.mxu2 %v5276_v52  ;;  %v5228_v51 = vor.u32 %v6078_v42, %v5225_v43  ;;  %v6061_v52 = vld [vmem:[%s8192_s17 + $0xb4] sm:$0xf]  ;;  %v5152_v58 = vor.u32 %v6069_v48, %v5151_v47  ;;  %v6119_v39 = vld [vmem:[%s8193_s19 + $0x80] sm:$0xff] }
 0x625   :  { %v6103_v42 = vld [vmem:[%s8193_s19] sm:$0xff]  ;;  %v6149_v47 = vld [vmem:[%s8193_s19 + $0x170] sm:$0xff] }
 0x626   :  { %v6127_v43 = vld [vmem:[%s8193_s19 + $0xc0] sm:$0xff]  ;;  %v6157_v48 = vld [vmem:[%s8193_s19 + $0x1b0] sm:$0xff] }
 0x627   :  { %2756 = vmatpush.bf16.msra.mxu3 %v5200_v59  ;;  %2769 = vmatpush.bf16.msrb.mxu0 %v5204_v61  ;;  %v5156_v59 = vor.u32 %v6061_v52, %v5153_v53  ;;  %v5087_v61 = vld [vmem:[%s8192_s17 + $0x30] sm:$0xf]  ;;  %v6148_v52 = vld [vmem:[%s8193_s19 + $0x168] sm:$0xff] }
 0x628   :  { %2782 = vmatpush.bf16.msrb.mxu1 %v5208_v0  ;;  %2795 = vmatpush.bf16.msrb.mxu2 %v5212_v1  ;;  %v5164_v0 = vor.u32 %v6062_v56, %v5161_v57  ;;  %v6045_v1 = vld [vmem:[%s8192_s17 + $0x34] sm:$0xf]  ;;  %v5088_v7 = vor.u32 %v6053_v62, %v5087_v61  ;;  %v6156_v53 = vld [vmem:[%s8193_s19 + $0x1a8] sm:$0xff]  ;;  %v6147_v56 = vld [vmem:[%s8193_s19 + $0x160] sm:$0xff] }
 0x629   :  { %v6155_v57 = vld [vmem:[%s8193_s19 + $0x1a0] sm:$0xff]  ;;  %v6146_v61 = vld [vmem:[%s8193_s19 + $0x158] sm:$0xff] }
 0x62a   :  { %v6154_v62 = vld [vmem:[%s8193_s19 + $0x198] sm:$0xff] }
 0x62b   :  { %2757 = vmatpush.bf16.msra.mxu3 %v5136_v8  ;;  %2770 = vmatpush.bf16.msrb.mxu0 %v5140_v9  ;;  %v5092_v8 = vor.u32 %v6045_v1, %v5089_v2  ;;  %v5096_v9 = vor.u32 %v6054_v4, %v5095_v3  ;;  %v6138_v1 = vld [vmem:[%s8193_s19 + $0x118] sm:$0xff]  ;;  %v6144_v3 = vld [vmem:[%s8193_s19 + $0x148] sm:$0xff] }
 0x62c   :  { %2783 = vmatpush.bf16.msrb.mxu1 %v5144_v11  ;;  %2796 = vmatpush.bf16.msrb.mxu2 %v5148_v12  ;;  %v6126_v11 = vld [vmem:[%s8193_s19 + $0xb8] sm:$0xff]  ;;  %v6152_v4 = vld [vmem:[%s8193_s19 + $0x188] sm:$0xff] }
 0x62d   :  { %v6110_v12 = vld [vmem:[%s8193_s19 + $0x38] sm:$0xff] }
 0x62e   :  { %v6162_v2 = vld [vmem:[%s8193_s19 + $0x1d8] sm:$0xff] }
 0x62f   :  { %2758 = vmatpush.bf16.msra.mxu3 %v5072_v18  ;;  %2771 = vmatpush.bf16.msrb.mxu0 %v5076_v19  ;;  %v6124_v18 = vld [vmem:[%s8193_s19 + $0xa8] sm:$0xff] }
 0x630   :  { %2784 = vmatpush.bf16.msrb.mxu1 %v5080_v22  ;;  %2797 = vmatpush.bf16.msrb.mxu2 %v5084_v24  ;;  %v6108_v19 = vld [vmem:[%s8193_s19 + $0x28] sm:$0xff]  ;;  %v6123_v22 = vld [vmem:[%s8193_s19 + $0xa0] sm:$0xff] }
 0x631   :  { %5297 = vmatmul.msk.bf16.vlgmr.msrb.gmra.mxu3 %vm149_vm1, %v7530_v45  ;;  %5298 = vmatmul.msk.bf16.vlgmr.msra.gmra.mxu0 %vm149_vm1, %v7530_v45  ;;  %v6107_v24 = vld [vmem:[%s8193_s19 + $0x20] sm:$0xff] }
 0x632   :  { %5299 = vmatmul.msk.bf16.vlgmr.msra.gmra.mxu1 %vm149_vm1, %v7530_v45  ;;  %5300 = vmatmul.msk.bf16.vlgmr.msra.gmra.mxu2 %vm149_vm1, %v7530_v45 }
 0x633   :  { %2807 = vmatpush.bf16.msrb.mxu3 %v5280_v32  ;;  %2820 = vmatpush.bf16.msra.mxu0 %v5284_v33  ;;  %v6121_v32 = vld [vmem:[%s8193_s19 + $0x90] sm:$0xff] }
 0x634   :  { %2833 = vmatpush.bf16.msra.mxu1 %v5288_v36  ;;  %2846 = vmatpush.bf16.msra.mxu2 %v5292_v37  ;;  %v6105_v33 = vld [vmem:[%s8193_s19 + $0x10] sm:$0xff]  ;;  %v6104_v36 = vld [vmem:[%s8193_s19 + $0x8] sm:$0xff] }
 0x635   :  { %v6128_v37 = vld [vmem:[%s8193_s19 + $0xc8] sm:$0xff] }
 0x637   :  { %2808 = vmatpush.bf16.msrb.mxu3 %v5216_v44  ;;  %2821 = vmatpush.bf16.msra.mxu0 %v5220_v46  ;;  %v6142_v44 = vld [vmem:[%s8193_s19 + $0x138] sm:$0xff] }
 0x638   :  { %2834 = vmatpush.bf16.msra.mxu1 %v5224_v50  ;;  %2847 = vmatpush.bf16.msra.mxu2 %v5228_v51  ;;  %v6166_v46 = vld [vmem:[%s8193_s19 + $0x1f8] sm:$0xff]  ;;  %v6141_v50 = vld [vmem:[%s8193_s19 + $0x130] sm:$0xff] }
 0x639   :  { %v6165_v51 = vld [vmem:[%s8193_s19 + $0x1f0] sm:$0xff] }
 0x63b   :  { %2809 = vmatpush.bf16.msrb.mxu3 %v5152_v58  ;;  %2822 = vmatpush.bf16.msra.mxu0 %v5156_v59  ;;  %v6139_v58 = vld [vmem:[%s8193_s19 + $0x120] sm:$0xff] }
 0x63c   :  { %2835 = vmatpush.bf16.msra.mxu1 %v5160_v63  ;;  %2848 = vmatpush.bf16.msra.mxu2 %v5164_v0  ;;  %v6163_v59 = vld [vmem:[%s8193_s19 + $0x1e0] sm:$0xff]  ;;  %v6145_v63 = vld [vmem:[%s8193_s19 + $0x150] sm:$0xff] }
 0x63d   :  { %v6153_v0 = vld [vmem:[%s8193_s19 + $0x190] sm:$0xff] }
 0x63f   :  { %2810 = vmatpush.bf16.msrb.mxu3 %v5088_v7  ;;  %2823 = vmatpush.bf16.msra.mxu0 %v5092_v8  ;;  %v6143_v7 = vld [vmem:[%s8193_s19 + $0x140] sm:$0xff] }
 0x640   :  { %2836 = vmatpush.bf16.msra.mxu1 %v5096_v9  ;;  %2849 = vmatpush.bf16.msra.mxu2 %v5100_v21  ;;  %v6151_v8 = vld [vmem:[%s8193_s19 + $0x180] sm:$0xff]  ;;  %v6136_v9 = vld [vmem:[%s8193_s19 + $0x108] sm:$0xff] }
 0x641   :  { %5301 = vmatmul.msk.bf16.vlgmr.msra.gmra.mxu3 %vm149_vm1, %v7530_v45  ;;  %5302 = vmatmul.msk.bf16.vlgmr.msrb.gmra.mxu0 %vm149_vm1, %v7530_v45  ;;  %v6160_v21 = vld [vmem:[%s8193_s19 + $0x1c8] sm:$0xff] }
 0x642   :  { %5303 = vmatmul.msk.bf16.vlgmr.msrb.gmra.mxu1 %vm149_vm1, %v7530_v45  ;;  %5304 = vmatmul.msk.bf16.vlgmr.msrb.gmra.mxu2 %vm149_vm1, %v7530_v45 }
 0x643   :  { %3928 = vmatpush.bf16.msrb.mxu0 %v6118_v10  ;;  %3915 = vmatpush.bf16.msra.mxu3 %v6110_v12  ;;  %v6135_v10 = vld [vmem:[%s8193_s19 + $0x100] sm:$0xff] }
 0x644   :  { %3941 = vmatpush.bf16.msrb.mxu1 %v6126_v11  ;;  %3954 = vmatpush.bf16.msrb.mxu2 %v6134_v13  ;;  %v6159_v11 = vld [vmem:[%s8193_s19 + $0x1c0] sm:$0xff] }
 0x645   :  { %v7927_v12 = vld [vmem:[%s8194_s18] sm:$0xff] }
 0x646   :  { %v2293_v13 = vperm.slane %v7927_v12, 1 }
 0x647   :  { %3929 = vmatpush.bf16.msrb.mxu0 %v6117_v14  ;;  %3916 = vmatpush.bf16.msra.mxu3 %v6109_v15  ;;  %v2294_v14 = vperm.slane %v7927_v12, 2 }
 0x648   :  { %3942 = vmatpush.bf16.msrb.mxu1 %v6125_v60  ;;  %3955 = vmatpush.bf16.msrb.mxu2 %v6133_v16 }
 0x64b   :  { %3930 = vmatpush.bf16.msrb.mxu0 %v6116_v26  ;;  %3917 = vmatpush.bf16.msra.mxu3 %v6108_v19  ;;  %v2292_v19 = vperm.slane %v7927_v12, 0 }
 0x64c   :  { %3943 = vmatpush.bf16.msrb.mxu1 %v6124_v18  ;;  %3956 = vmatpush.bf16.msrb.mxu2 %v6132_v20 }
 0x64f   :  { %3931 = vmatpush.bf16.msrb.mxu0 %v6115_v17  ;;  %3918 = vmatpush.bf16.msra.mxu3 %v6107_v24  ;;  %v2295_v17 = vperm.slane %v7927_v12, 3 }
 0x650   :  { %3944 = vmatpush.bf16.msrb.mxu1 %v6123_v22  ;;  %3957 = vmatpush.bf16.msrb.mxu2 %v6131_v25  ;;  %v6182_v22 = vld [vmem:[%s8193_s19 + $0x278] sm:$0xff] }
 0x651   :  { %5305 = vmatmul.msk.bf16.vlgmr.msrb.gmra.mxu3 %vm149_vm1, %v7530_v45  ;;  %5306 = vmatmul.msk.bf16.vlgmr.msra.gmra.mxu0 %vm149_vm1, %v7530_v45  ;;  %v6190_v25 = vld [vmem:[%s8193_s19 + $0x2b8] sm:$0xff] }
 0x652   :  { %5307 = vmatmul.msk.bf16.vlgmr.msra.gmra.mxu1 %vm149_vm1, %v7530_v45  ;;  %5308 = vmatmul.msk.bf16.vlgmr.msra.gmra.mxu2 %vm149_vm1, %v7530_v45  ;;  %v6129_v45 = vld [vmem:[%s8193_s19 + $0xd0] sm:$0xff] }
 0x653   :  { %3932 = vmatpush.bf16.msrb.mxu0 %v6114_v27  ;;  %3919 = vmatpush.bf16.msra.mxu3 %v6106_v29 }
 0x654   :  { %3945 = vmatpush.bf16.msrb.mxu1 %v6122_v28  ;;  %3958 = vmatpush.bf16.msrb.mxu2 %v6130_v30 }
 0x657   :  { %3933 = vmatpush.bf16.msrb.mxu0 %v6113_v31  ;;  %3920 = vmatpush.bf16.msra.mxu3 %v6105_v33  ;;  %v6181_v33 = vld [vmem:[%s8193_s19 + $0x270] sm:$0xff] }
 0x658   :  { %3946 = vmatpush.bf16.msrb.mxu1 %v6121_v32  ;;  %3959 = vmatpush.bf16.msrb.mxu2 %v6129_v45 }
 0x65b   :  { %3934 = vmatpush.bf16.msrb.mxu0 %v6112_v34  ;;  %3921 = vmatpush.bf16.msra.mxu3 %v6104_v36 }
 0x65c   :  { %3947 = vmatpush.bf16.msrb.mxu1 %v6120_v35  ;;  %3960 = vmatpush.bf16.msrb.mxu2 %v6128_v37  ;;  %v6189_v35 = vld [vmem:[%s8193_s19 + $0x2b0] sm:$0xff]  ;;  %v6174_v37 = vld [vmem:[%s8193_s19 + $0x238] sm:$0xff] }
 0x65f   :  { %3935 = vmatpush.bf16.msrb.mxu0 %v6111_v38  ;;  %3922 = vmatpush.bf16.msra.mxu3 %v6103_v42  ;;  %v6188_v42 = vld [vmem:[%s8193_s19 + $0x2a8] sm:$0xff] }
 0x660   :  { %3948 = vmatpush.bf16.msrb.mxu1 %v6119_v39  ;;  %3961 = vmatpush.bf16.msrb.mxu2 %v6127_v43  ;;  %v6198_v39 = vld [vmem:[%s8193_s19 + $0x2f8] sm:$0xff]  ;;  %v2297_v43 = vperm.slane %v7927_v12, 5 }
 0x663   :  { %3980 = vmatpush.bf16.msra.mxu0 %v6150_v40  ;;  %3967 = vmatpush.bf16.msrb.mxu3 %v6142_v44 }
 0x664   :  { %3993 = vmatpush.bf16.msra.mxu1 %v6158_v49  ;;  %4006 = vmatpush.bf16.msra.mxu2 %v6166_v46  ;;  %v6180_v49 = vld [vmem:[%s8193_s19 + $0x268] sm:$0xff]  ;;  %v2298_v46 = vperm.slane %v7927_v12, 6 }
 0x667   :  { %3981 = vmatpush.bf16.msra.mxu0 %v6149_v47  ;;  %3968 = vmatpush.bf16.msrb.mxu3 %v6141_v50  ;;  %v6173_v47 = vld [vmem:[%s8193_s19 + $0x230] sm:$0xff] }
 0x668   :  { %3994 = vmatpush.bf16.msra.mxu1 %v6157_v48  ;;  %4007 = vmatpush.bf16.msra.mxu2 %v6165_v51  ;;  %v6197_v50 = vld [vmem:[%s8193_s19 + $0x2f0] sm:$0xff] }
 0x66b   :  { %3982 = vmatpush.bf16.msra.mxu0 %v6148_v52  ;;  %3969 = vmatpush.bf16.msrb.mxu3 %v6140_v54  ;;  %v6179_v52 = vld [vmem:[%s8193_s19 + $0x260] sm:$0xff] }
 0x66c   :  { %3995 = vmatpush.bf16.msra.mxu1 %v6156_v53  ;;  %4008 = vmatpush.bf16.msra.mxu2 %v6164_v55  ;;  %v6187_v55 = vld [vmem:[%s8193_s19 + $0x2a0] sm:$0xff] }
 0x66f   :  { %3983 = vmatpush.bf16.msra.mxu0 %v6147_v56  ;;  %3970 = vmatpush.bf16.msrb.mxu3 %v6139_v58 }
 0x670   :  { %3996 = vmatpush.bf16.msra.mxu1 %v6155_v57  ;;  %4009 = vmatpush.bf16.msra.mxu2 %v6163_v59  ;;  %v6172_v57 = vld [vmem:[%s8193_s19 + $0x228] sm:$0xff] }
 0x671   :  { %v6196_v59 = vld [vmem:[%s8193_s19 + $0x2e8] sm:$0xff] }
 0x673   :  { %3984 = vmatpush.bf16.msra.mxu0 %v6146_v61  ;;  %3971 = vmatpush.bf16.msrb.mxu3 %v6138_v1  ;;  %v2296_v61 = vperm.slane %v7927_v12, 4 }
 0x674   :  { %3997 = vmatpush.bf16.msra.mxu1 %v6154_v62  ;;  %4010 = vmatpush.bf16.msra.mxu2 %v6162_v2  ;;  %v6186_v2 = vld [vmem:[%s8193_s19 + $0x298] sm:$0xff] }
 0x677   :  { %3985 = vmatpush.bf16.msra.mxu0 %v6145_v63  ;;  %3972 = vmatpush.bf16.msrb.mxu3 %v6137_v5  ;;  %v2299_v63 = vperm.slane %v7927_v12, 7  ;;  %v6171_v5 = vld [vmem:[%s8193_s19 + $0x220] sm:$0xff] }
 0x678   :  { %3998 = vmatpush.bf16.msra.mxu1 %v6153_v0  ;;  %4011 = vmatpush.bf16.msra.mxu2 %v6161_v6  ;;  %v6178_v0 = vld [vmem:[%s8193_s19 + $0x258] sm:$0xff] }
 0x67b   :  { %3986 = vmatpush.bf16.msra.mxu0 %v6144_v3  ;;  %3973 = vmatpush.bf16.msrb.mxu3 %v6136_v9 }
 0x67c   :  { %3999 = vmatpush.bf16.msra.mxu1 %v6152_v4  ;;  %4012 = vmatpush.bf16.msra.mxu2 %v6160_v21 }
 0x67f   :  { %3987 = vmatpush.bf16.msra.mxu0 %v6143_v7  ;;  %3974 = vmatpush.bf16.msrb.mxu3 %v6135_v10  ;;  %v6177_v10 = vld [vmem:[%s8193_s19 + $0x250] sm:$0xff] }
 0x680   :  { %4000 = vmatpush.bf16.msra.mxu1 %v6151_v8  ;;  %4013 = vmatpush.bf16.msra.mxu2 %v6159_v11  ;;  %v6195_v8 = vld [vmem:[%s8193_s19 + $0x2e0] sm:$0xff] }
 0x69e   :  { %v2669_v60 = vpop.f32.mrf.mxu0 }
 0x69f   :  { %v2670_v15 = vadd.f32 %v2669_v60, %v2293_v13  ;;  %v2682_v16 = vpop.f32.mrf.mxu1  ;;  %v6185_v13 = vld [vmem:[%s8193_s19 + $0x290] sm:$0xff]  ;;  %v6170_v60 = vld [vmem:[%s8193_s19 + $0x218] sm:$0xff] }
 0x6a0   :  { %v2683_v26 = vadd.f32 %v2682_v16, %v2294_v14 }
 0x6a1   :  { %v2856_v18 = vmax.f32 %v2670_v15, 0.0  ;;  %v8003_v15 = vld [vmem:[%s8194_s18 + $0x8] sm:$0xff] }
 0x6a2   :  { %v2857_v20 = vmax.f32 %v2683_v26, 0.0  ;;  %v6194_v26 = vld [vmem:[%s8193_s19 + $0x2d8] sm:$0xff] }
 0x6a3   :  { %v2872_v24 = vpack.c.bf16 %v2856_v18, %v2856_v18 }
 0x6a4   :  { %v2873_v27 = vpack.c.bf16 %v2857_v20, %v2857_v20  ;;  %v2656_v28 = vpop.f32.mrf.mxu3  ;;  %v6184_v20 = vld [vmem:[%s8193_s19 + $0x288] sm:$0xff] }
 0x6a5   :  { %v2657_v29 = vadd.f32 %v2656_v28, %v2292_v19  ;;  %v2695_v30 = vpop.f32.mrf.mxu2  ;;  %3936 = vmatmul.bf16.vlgmr.msrb.gmra.mxu0 %v2872_v24  ;;  %v6176_v19 = vld [vmem:[%s8193_s19 + $0x248] sm:$0xff]  ;;  %v2302_v24 = vperm.slane %v8003_v15, 2  ;;  %v6193_v28 = vld [vmem:[%s8193_s19 + $0x2d0] sm:$0xff] }
 0x6a6   :  { %v2696_v31 = vadd.f32 %v2695_v30, %v2295_v17  ;;  %3949 = vmatmul.bf16.vlgmr.msrb.gmra.mxu1 %v2873_v27  ;;  %4032 = vmatpush.bf16.msrb.mxu0 %v6182_v22  ;;  %v2671_v32 = vpop.f32.mrf.mxu0  ;;  %v2301_v17 = vperm.slane %v8003_v15, 1  ;;  %v6175_v30 = vld [vmem:[%s8193_s19 + $0x240] sm:$0xff] }
 0x6a7   :  { %v2855_v45 = vmax.f32 %v2657_v29, 0.0  ;;  %4045 = vmatpush.bf16.msrb.mxu1 %v6190_v25  ;;  %v2684_v34 = vpop.f32.mrf.mxu1  ;;  %v6169_v25 = vld [vmem:[%s8193_s19 + $0x210] sm:$0xff] }
 0x6a8   :  { %v2858_v36 = vmax.f32 %v2696_v31, 0.0 }
 0x6a9   :  { %v2871_v38 = vpack.c.bf16 %v2855_v45, %v2855_v45  ;;  %v6214_v45 = vld [vmem:[%s8193_s19 + $0x378] sm:$0xff] }
 0x6aa   :  { %v2874_v40 = vpack.c.bf16 %v2858_v36, %v2858_v36  ;;  %4033 = vmatpush.bf16.msrb.mxu0 %v6181_v33  ;;  %v6183_v33 = vld [vmem:[%s8193_s19 + $0x280] sm:$0xff]  ;;  %v6168_v36 = vld [vmem:[%s8193_s19 + $0x208] sm:$0xff] }
 0x6ab   :  { %4046 = vmatpush.bf16.msrb.mxu1 %v6189_v35  ;;  %3923 = vmatmul.bf16.vlgmr.msra.gmra.mxu3 %v2871_v38  ;;  %v6222_v35 = vld [vmem:[%s8193_s19 + $0x3b8] sm:$0xff]  ;;  %v6192_v38 = vld [vmem:[%s8193_s19 + $0x2c8] sm:$0xff] }
 0x6ac   :  { %3962 = vmatmul.bf16.vlgmr.msrb.gmra.mxu2 %v2874_v40  ;;  %4019 = vmatpush.bf16.msra.mxu3 %v6174_v37  ;;  %v2658_v44 = vpop.f32.mrf.mxu3 }
 0x6ad   :  { %4058 = vmatpush.bf16.msrb.mxu2 %v6198_v39  ;;  %v2697_v48 = vpop.f32.mrf.mxu2  ;;  %v2300_v39 = vperm.slane %v8003_v15, 0 }
 0x6ae   :  { %4034 = vmatpush.bf16.msrb.mxu0 %v6180_v49  ;;  %v2721_v51 = vpop.f32.mrf.mxu0  ;;  %v2303_v49 = vperm.slane %v8003_v15, 3  ;;  %v6167_v48 = vld [vmem:[%s8193_s19 + $0x200] sm:$0xff] }
 0x6af   :  { %4047 = vmatpush.bf16.msrb.mxu1 %v6188_v42  ;;  %v2722_v53 = vadd.f32 %v2721_v51, %v2297_v43  ;;  %v2734_v54 = vpop.f32.mrf.mxu1  ;;  %v6213_v43 = vld [vmem:[%s8193_s19 + $0x370] sm:$0xff] }
 0x6b0   :  { %v2735_v56 = vadd.f32 %v2734_v54, %v2298_v46  ;;  %4020 = vmatpush.bf16.msra.mxu3 %v6173_v47  ;;  %v6221_v47 = vld [vmem:[%s8193_s19 + $0x3b0] sm:$0xff] }
 0x6b1   :  { %v2860_v58 = vmax.f32 %v2722_v53, 0.0  ;;  %4059 = vmatpush.bf16.msrb.mxu2 %v6197_v50  ;;  %v6206_v53 = vld [vmem:[%s8193_s19 + $0x338] sm:$0xff] }
 0x6b2   :  { %v2861_v62 = vmax.f32 %v2735_v56, 0.0  ;;  %4035 = vmatpush.bf16.msrb.mxu0 %v6179_v52  ;;  %v6191_v52 = vld [vmem:[%s8193_s19 + $0x2c0] sm:$0xff]  ;;  %v6230_v56 = vld [vmem:[%s8193_s19 + $0x3f8] sm:$0xff] }
 0x6b3   :  { %v2876_v1 = vpack.c.bf16 %v2860_v58, %v2860_v58  ;;  %4048 = vmatpush.bf16.msrb.mxu1 %v6187_v55 }
 0x6b4   :  { %v2877_v3 = vpack.c.bf16 %v2861_v62, %v2861_v62  ;;  %4021 = vmatpush.bf16.msra.mxu3 %v6172_v57  ;;  %v2708_v4 = vpop.f32.mrf.mxu3  ;;  %v6220_v62 = vld [vmem:[%s8193_s19 + $0x3a8] sm:$0xff] }
 0x6b5   :  { %4060 = vmatpush.bf16.msrb.mxu2 %v6196_v59  ;;  %v2709_v6 = vadd.f32 %v2708_v4, %v2296_v61  ;;  %v2747_v7 = vpop.f32.mrf.mxu2  ;;  %3988 = vmatmul.bf16.vlgmr.msra.gmra.mxu0 %v2876_v1  ;;  %v6212_v59 = vld [vmem:[%s8193_s19 + $0x368] sm:$0xff] }
 0x6b6   :  { %v2748_v9 = vadd.f32 %v2747_v7, %v2299_v63  ;;  %4001 = vmatmul.bf16.vlgmr.msra.gmra.mxu1 %v2877_v3  ;;  %4036 = vmatpush.bf16.msrb.mxu0 %v6178_v0  ;;  %v2723_v21 = vpop.f32.mrf.mxu0  ;;  %v6205_v0 = vld [vmem:[%s8193_s19 + $0x330] sm:$0xff]  ;;  %v6211_v3 = vld [vmem:[%s8193_s19 + $0x360] sm:$0xff]  ;;  %v6204_v7 = vld [vmem:[%s8193_s19 + $0x328] sm:$0xff] }
 0x6b7   :  { %v2859_v11 = vmax.f32 %v2709_v6, 0.0  ;;  %4049 = vmatpush.bf16.msrb.mxu1 %v6186_v2  ;;  %v2736_v12 = vpop.f32.mrf.mxu1  ;;  %v6229_v2 = vld [vmem:[%s8193_s19 + $0x3f0] sm:$0xff] }
 0x6b8   :  { %v2862_v14 = vmax.f32 %v2748_v9, 0.0  ;;  %4022 = vmatpush.bf16.msra.mxu3 %v6171_v5  ;;  %v6219_v5 = vld [vmem:[%s8193_s19 + $0x3a0] sm:$0xff]  ;;  %v6228_v9 = vld [vmem:[%s8193_s19 + $0x3e8] sm:$0xff] }
 0x6b9   :  { %v2875_v16 = vpack.c.bf16 %v2859_v11, %v2859_v11  ;;  %4061 = vmatpush.bf16.msrb.mxu2 %v6195_v8  ;;  %v6218_v11 = vld [vmem:[%s8193_s19 + $0x398] sm:$0xff]  ;;  %v6203_v12 = vld [vmem:[%s8193_s19 + $0x320] sm:$0xff] }
 0x6ba   :  { %v2878_v18 = vpack.c.bf16 %v2862_v14, %v2862_v14  ;;  %4037 = vmatpush.bf16.msrb.mxu0 %v6177_v10  ;;  %v6210_v10 = vld [vmem:[%s8193_s19 + $0x358] sm:$0xff]  ;;  %v6209_v14 = vld [vmem:[%s8193_s19 + $0x350] sm:$0xff] }
 0x6bb   :  { %4050 = vmatpush.bf16.msrb.mxu1 %v6185_v13  ;;  %3975 = vmatmul.bf16.vlgmr.msrb.gmra.mxu3 %v2875_v16  ;;  %v6227_v13 = vld [vmem:[%s8193_s19 + $0x3e0] sm:$0xff] }
 0x6bc   :  { %4014 = vmatmul.bf16.vlgmr.msra.gmra.mxu2 %v2878_v18  ;;  %4023 = vmatpush.bf16.msra.mxu3 %v6170_v60  ;;  %v2710_v22 = vpop.f32.mrf.mxu3  ;;  %v2305_v60 = vperm.slane %v8003_v15, 5  ;;  %v2306_v18 = vperm.slane %v8003_v15, 6 }
 0x6bd   :  { %4062 = vmatpush.bf16.msrb.mxu2 %v6194_v26  ;;  %v2749_v27 = vpop.f32.mrf.mxu2  ;;  %v6217_v26 = vld [vmem:[%s8193_s19 + $0x390] sm:$0xff]  ;;  %v6226_v22 = vld [vmem:[%s8193_s19 + $0x3d8] sm:$0xff] }
 0x6be   :  { %4038 = vmatpush.bf16.msrb.mxu0 %v6176_v19  ;;  %v2773_v29 = vpop.f32.mrf.mxu0 }
 0x6bf   :  { %4051 = vmatpush.bf16.msrb.mxu1 %v6184_v20  ;;  %v2774_v31 = vadd.f32 %v2773_v29, %v2301_v17  ;;  %v2786_v32 = vpop.f32.mrf.mxu1  ;;  %v6202_v20 = vld [vmem:[%s8193_s19 + $0x318] sm:$0xff] }
 0x6c0   :  { %v2787_v34 = vadd.f32 %v2786_v32, %v2302_v24  ;;  %4024 = vmatpush.bf16.msra.mxu3 %v6169_v25  ;;  %v6208_v25 = vld [vmem:[%s8193_s19 + $0x348] sm:$0xff]  ;;  %v6225_v32 = vld [vmem:[%s8193_s19 + $0x3d0] sm:$0xff] }
 0x6c1   :  { %v2864_v37 = vmax.f32 %v2774_v31, 0.0  ;;  %4063 = vmatpush.bf16.msrb.mxu2 %v6193_v28  ;;  %v6216_v28 = vld [vmem:[%s8193_s19 + $0x388] sm:$0xff]  ;;  %v2304_v31 = vperm.slane %v8003_v15, 4 }
 0x6c2   :  { %v2865_v40 = vmax.f32 %v2787_v34, 0.0  ;;  %4039 = vmatpush.bf16.msrb.mxu0 %v6175_v30  ;;  %v6201_v30 = vld [vmem:[%s8193_s19 + $0x310] sm:$0xff] }
 0x6c3   :  { %v2880_v42 = vpack.c.bf16 %v2864_v37, %v2864_v37  ;;  %4052 = vmatpush.bf16.msrb.mxu1 %v6183_v33  ;;  %v2307_v33 = vperm.slane %v8003_v15, 7 }
 0x6c4   :  { %v2881_v44 = vpack.c.bf16 %v2865_v40, %v2865_v40  ;;  %4025 = vmatpush.bf16.msra.mxu3 %v6168_v36  ;;  %v2760_v46 = vpop.f32.mrf.mxu3  ;;  %v6215_v36 = vld [vmem:[%s8193_s19 + $0x380] sm:$0xff]  ;;  %v6224_v40 = vld [vmem:[%s8193_s19 + $0x3c8] sm:$0xff] }
 0x6c5   :  { %4064 = vmatpush.bf16.msrb.mxu2 %v6192_v38  ;;  %v2761_v50 = vadd.f32 %v2760_v46, %v2300_v39  ;;  %v2799_v51 = vpop.f32.mrf.mxu2  ;;  %4040 = vmatmul.bf16.vlgmr.msrb.gmra.mxu0 %v2880_v42  ;;  %v6200_v39 = vld [vmem:[%s8193_s19 + $0x308] sm:$0xff] }
 0x6c6   :  { %4084 = vmatpush.bf16.msra.mxu0 %v6214_v45  ;;  %v2800_v54 = vadd.f32 %v2799_v51, %v2303_v49  ;;  %4053 = vmatmul.bf16.vlgmr.msrb.gmra.mxu1 %v2881_v44  ;;  %v2775_v55 = vpop.f32.mrf.mxu0  ;;  %v6207_v45 = vld [vmem:[%s8193_s19 + $0x340] sm:$0xff] }
 0x6c7   :  { %4097 = vmatpush.bf16.msra.mxu1 %v6222_v35  ;;  %v2863_v57 = vmax.f32 %v2761_v50, 0.0  ;;  %v2788_v58 = vpop.f32.mrf.mxu1  ;;  %v6199_v44 = vld [vmem:[%s8193_s19 + $0x300] sm:$0xff] }
 0x6c8   :  { %v2866_v61 = vmax.f32 %v2800_v54, 0.0  ;;  %4026 = vmatpush.bf16.msra.mxu3 %v6167_v48 }
 0x6c9   :  { %v2879_v63 = vpack.c.bf16 %v2863_v57, %v2863_v57  ;;  %4065 = vmatpush.bf16.msrb.mxu2 %v6191_v52 }
 0x6ca   :  { %4085 = vmatpush.bf16.msra.mxu0 %v6213_v43  ;;  %v2882_v1 = vpack.c.bf16 %v2866_v61, %v2866_v61 }
 0x6cb   :  { %4098 = vmatpush.bf16.msra.mxu1 %v6221_v47  ;;  %4027 = vmatmul.bf16.vlgmr.msra.gmra.mxu3 %v2879_v63  ;;  %v6223_v47 = vld [vmem:[%s8193_s19 + $0x3c0] sm:$0xff] }
 0x6cc   :  { %4071 = vmatpush.bf16.msrb.mxu3 %v6206_v53  ;;  %4066 = vmatmul.bf16.vlgmr.msrb.gmra.mxu2 %v2882_v1  ;;  %v2762_v4 = vpop.f32.mrf.mxu3  ;;  %v6246_v1 = vld [vmem:[%s8226_s15] ss:$0 sm:$0xff] }
 0x6cd   :  { %4110 = vmatpush.bf16.msra.mxu2 %v6230_v56  ;;  %v2801_v6 = vpop.f32.mrf.mxu2 }
 0x6ce   :  { %4086 = vmatpush.bf16.msra.mxu0 %v6212_v59  ;;  %v2825_v8 = vpop.f32.mrf.mxu0 }
 0x6cf   :  { %4099 = vmatpush.bf16.msra.mxu1 %v6220_v62  ;;  %v2838_v21 = vpop.f32.mrf.mxu1  ;;  %v2826_v27 = vadd.f32 %v2825_v8, %v2305_v60 }
 0x6d0   :  { %4072 = vmatpush.bf16.msrb.mxu3 %v6205_v0  ;;  %v2839_v29 = vadd.f32 %v2838_v21, %v2306_v18 }
 0x6d1   :  { %4111 = vmatpush.bf16.msra.mxu2 %v6229_v2  ;;  %v2868_v34 = vmax.f32 %v2826_v27, 0.0 }
 0x6d2   :  { %4087 = vmatpush.bf16.msra.mxu0 %v6211_v3  ;;  %v2869_v37 = vmax.f32 %v2839_v29, 0.0 }
 0x6d3   :  { %4100 = vmatpush.bf16.msra.mxu1 %v6219_v5  ;;  %v2884_v42 = vpack.c.bf16 %v2868_v34, %v2868_v34 }
 0x6d4   :  { %4073 = vmatpush.bf16.msrb.mxu3 %v6204_v7  ;;  %v2812_v16 = vpop.f32.mrf.mxu3  ;;  %v2885_v43 = vpack.c.bf16 %v2869_v37, %v2869_v37 }
 0x6d5   :  { %4112 = vmatpush.bf16.msra.mxu2 %v6228_v9  ;;  %v2851_v19 = vpop.f32.mrf.mxu2  ;;  %v2813_v15 = vadd.f32 %v2812_v16, %v2304_v31 }
 0x6d6   :  { %4088 = vmatpush.bf16.msra.mxu0 %v6210_v10  ;;  %v2827_v17 = vpop.f32.mrf.mxu0  ;;  %v2852_v49 = vadd.f32 %v2851_v19, %v2307_v33 }
 0x6d7   :  { %4101 = vmatpush.bf16.msra.mxu1 %v6218_v11  ;;  %v2840_v24 = vpop.f32.mrf.mxu1  ;;  %v2867_v46 = vmax.f32 %v2813_v15, 0.0 }
 0x6d8   :  { %4074 = vmatpush.bf16.msrb.mxu3 %v6203_v12  ;;  %v2870_v48 = vmax.f32 %v2852_v49, 0.0 }
 0x6d9   :  { %4113 = vmatpush.bf16.msra.mxu2 %v6227_v13  ;;  %v2883_v50 = vpack.c.bf16 %v2867_v46, %v2867_v46  ;;  %v6232_v46 = vld [vmem:[%s8199_s23 + $0x8] sm:$0xff] }
 0x6da   :  { %4089 = vmatpush.bf16.msra.mxu0 %v6209_v14  ;;  %v2886_v51 = vpack.c.bf16 %v2870_v48, %v2870_v48 }
 0x6db   :  { %4102 = vmatpush.bf16.msra.mxu1 %v6217_v26 }
 0x6dc   :  { %4075 = vmatpush.bf16.msrb.mxu3 %v6202_v20  ;;  %v2814_v35 = vpop.f32.mrf.mxu3 }
 0x6dd   :  { %4114 = vmatpush.bf16.msra.mxu2 %v6226_v22  ;;  %v2853_v38 = vpop.f32.mrf.mxu2 }
 0x6de   :  { %4090 = vmatpush.bf16.msra.mxu0 %v6208_v25 }
 0x6df   :  { %4103 = vmatpush.bf16.msra.mxu1 %v6216_v28 }
 0x6e0   :  { %4076 = vmatpush.bf16.msrb.mxu3 %v6201_v30 }
 0x6e1   :  { %4115 = vmatpush.bf16.msra.mxu2 %v6225_v32 }
 0x6e2   :  { %4091 = vmatpush.bf16.msra.mxu0 %v6207_v45 }
 0x6e3   :  { %4104 = vmatpush.bf16.msra.mxu1 %v6215_v36 }
 0x6e4   :  { %4077 = vmatpush.bf16.msrb.mxu3 %v6200_v39 }
 0x6e5   :  { %4116 = vmatpush.bf16.msra.mxu2 %v6224_v40  ;;  %4092 = vmatmul.bf16.vlgmr.msra.gmra.mxu0 %v2884_v42 }
 0x6e6   :  { %4105 = vmatmul.bf16.vlgmr.msra.gmra.mxu1 %v2885_v43 }
 0x6e8   :  { %4078 = vmatpush.bf16.msrb.mxu3 %v6199_v44  ;;  %v6234_v44 = vld [vmem:[%s8199_s23 + $0x18] sm:$0xff] }
 0x6e9   :  { %4117 = vmatpush.bf16.msra.mxu2 %v6223_v47  ;;  %v6231_v47 = vld [vmem:[%s8199_s23] sm:$0xff] }
 0x6eb   :  { %4079 = vmatmul.bf16.vlgmr.msrb.gmra.mxu3 %v2883_v50 }
 0x6ec   :  { %4118 = vmatmul.bf16.vlgmr.msra.gmra.mxu2 %v2886_v51  ;;  %4200 = vmatpush.bf16.msra.mxu3 %v6234_v44 }
 0x722   :  { %v3937_v52 = vpop.f32.mrf.mxu0 }
 0x723   :  { %v3950_v53 = vpop.f32.mrf.mxu1 }
 0x72a   :  { %v3939_v54 = vpop.f32.mrf.mxu0 }
 0x72b   :  { %v3952_v55 = vpop.f32.mrf.mxu1 }
 0x72e   :  { %v3924_v56 = vpop.f32.mrf.mxu3 }
 0x72f   :  { %v3963_v57 = vpop.f32.mrf.mxu2  ;;  %v3925_v4 = vadd.f32 %v6246_v1, %v3924_v56  ;;  %v6249_v1 = vld [vmem:[%s8198_s24] ss:$0 sm:$0xff] }
 0x731   :  { %v3938_v7 = vadd.f32 %v3937_v52, %v3925_v4 }
 0x732   :  { %v3989_v58 = vpop.f32.mrf.mxu0 }
 0x733   :  { %v4002_v59 = vpop.f32.mrf.mxu1  ;;  %v3951_v21 = vadd.f32 %v3950_v53, %v3938_v7 }
 0x735   :  { %v3964_v12 = vadd.f32 %v3963_v57, %v3951_v21 }
 0x736   :  { %v3926_v61 = vpop.f32.mrf.mxu3 }
 0x737   :  { %v3965_v62 = vpop.f32.mrf.mxu2 }
 0x73a   :  { %v3991_v63 = vpop.f32.mrf.mxu0 }
 0x73b   :  { %v4004_v0 = vpop.f32.mrf.mxu1 }
 0x73e   :  { %v3976_v2 = vpop.f32.mrf.mxu3 }
 0x73f   :  { %v4015_v3 = vpop.f32.mrf.mxu2  ;;  %v3977_v60 = vadd.f32 %v3976_v2, %v3964_v12 }
 0x741   :  { %v3990_v16 = vadd.f32 %v3989_v58, %v3977_v60  ;;  %v6247_v58 = vld [vmem:[%s8196_s21] ss:$0 sm:$0xff] }
 0x742   :  { %v4041_v5 = vpop.f32.mrf.mxu0 }
 0x743   :  { %v4054_v6 = vpop.f32.mrf.mxu1  ;;  %v4003_v19 = vadd.f32 %v4002_v59, %v3990_v16 }
 0x745   :  { %v4016_v20 = vadd.f32 %v4015_v3, %v4003_v19 }
 0x746   :  { %v3978_v8 = vpop.f32.mrf.mxu3 }
 0x747   :  { %v4017_v9 = vpop.f32.mrf.mxu2 }
 0x74a   :  { %v4043_v10 = vpop.f32.mrf.mxu0 }
 0x74b   :  { %v4056_v11 = vpop.f32.mrf.mxu1 }
 0x74e   :  { %v4028_v13 = vpop.f32.mrf.mxu3 }
 0x74f   :  { %v4067_v14 = vpop.f32.mrf.mxu2  ;;  %v4029_v17 = vadd.f32 %v4028_v13, %v4016_v20 }
 0x751   :  { %v4042_v25 = vadd.f32 %v4041_v5, %v4029_v17 }
 0x753   :  { %v4055_v27 = vadd.f32 %v4054_v6, %v4042_v25 }
 0x755   :  { %v4068_v30 = vadd.f32 %v4067_v14, %v4055_v27 }
 0x756   :  { %v4030_v26 = vpop.f32.mrf.mxu3 }
 0x757   :  { %v4069_v18 = vpop.f32.mrf.mxu2 }
 0x762   :  { %v4093_v22 = vpop.f32.mrf.mxu0 }
 0x763   :  { %v4106_v24 = vpop.f32.mrf.mxu1 }
 0x76a   :  { %v4095_v28 = vpop.f32.mrf.mxu0 }
 0x76b   :  { %v4108_v29 = vpop.f32.mrf.mxu1 }
 0x76e   :  { %v4080_v31 = vpop.f32.mrf.mxu3 }
 0x76f   :  { %v4081_v32 = vadd.f32 %v4080_v31, %v4068_v30  ;;  %v4119_v33 = vpop.f32.mrf.mxu2 }
 0x771   :  { %v4094_v45 = vadd.f32 %v4093_v22, %v4081_v32 }
 0x773   :  { %v4107_v34 = vadd.f32 %v4106_v24, %v4094_v45 }
 0x775   :  { %v4120_v35 = vadd.f32 %v4119_v33, %v4107_v34 }
 0x776   :  { %v4082_v36 = vpop.f32.mrf.mxu3 }
 0x777   :  { %v4121_v37 = vpop.f32.mrf.mxu2  ;;  %v4123_v38 = vadd.f32 %v4120_v35, %v7517_v41  ;;  %v6233_v41 = vld [vmem:[%s8199_s23 + $0x10] sm:$0xff] }
 0x778   :  { %4201 = vmatpush.bf16.msra.mxu3 %v6233_v41 }
 0x779   :  { %v4124_v39 = vsel %vm149_vm1, %v4123_v38, 0.0 }
 0x77a   :  { %4125 = vadd.xlane.f32.xlu0 %v4124_v39 }
 0x77c   :  { %4202 = vmatpush.bf16.msra.mxu3 %v6232_v46 }
 0x780   :  { %4203 = vmatpush.bf16.msra.mxu3 %v6231_v47 }
 0x7ed   :  { %v4126_v15 = vpop.xlane.xlu0 %4125 }
 0x7ee   :  { %v4127_v40 = vmul.f32 %v4126_v15, %v6417_v23 }
 0x7f0   :  { %v4128_v49 = vsub.f32 %v4123_v38, %v4127_v40 }
 0x7f2   :  { %v4129_v42 = vmul.f32 %v4128_v49, %v4128_v49 }
 0x7f4   :  { %v4130_v43 = vsel %vm149_vm1, %v4129_v42, 0.0 }
 0x7f5   :  { %4131 = vadd.xlane.f32.xlu1 %v4130_v43 }
 0x868   :  { %v4132_v48 = vpop.xlane.xlu1 %4131 }
 0x869   :  { %v4133_v50 = vmul.f32 %v4132_v48, %v6417_v23  ;;  %v6248_v23 = vld [vmem:[%s8197_s22] ss:$0 sm:$0xff] }
 0x86b   :  { %v4134_v51 = vadd.f32 1e-05, %v4133_v50 }
 0x86d   :  { %6258 = vrsqrt.f32 %v4134_v51  ;;  %vm4141_vm13 = vweird.f32 %v4134_v51 }
 0x873   :  { %v6259_v52 = vpop.eup %6258 }
 0x874   :  { %v4136_v53 = vmul.f32 %v6259_v52, %v4134_v51  ;;  %vm4142_vm12 = vweird.f32 %v6259_v52 }
 0x875   :  { %vm4143_vm14 = vmor %vm4141_vm13, %vm4142_vm12 }
 0x876   :  { %v4137_v54 = vmul.f32 %v6259_v52, %v4136_v53 }
 0x878   :  { %v4138_v55 = vmul.f32 0.5, %v4137_v54 }
 0x87a   :  { %v4139_v56 = vsub.f32 1.5, %v4138_v55 }
 0x87c   :  { %v4140_v57 = vmul.f32 %v6259_v52, %v4139_v56 }
 0x87e   :  { %v4144_v59 = vsel %vm4143_vm14, %v6259_v52, %v4140_v57 }
 0x87f   :  { %v4145_v61 = vmul.f32 %v4144_v59, %v4128_v49 }
 0x881   :  { %v4150_v62 = vmul.f32 %v6247_v58, %v4145_v61 }
 0x883   :  { %v4155_v63 = vadd.f32 %v6248_v23, %v4150_v62 }
 0x885   :  { %v4156_v0 = vpack.c.bf16 %v4155_v63, %v4155_v63 }
 0x887   :  { %5837 = vmatmul.msk.bf16.vlgmr.msra.gmra.mxu3 %vm149_vm1, %v4156_v0 }
 0x90a   :  { %v4205_v2 = vpop.f32.mrf.mxu3 }
 0x90b   :  { %v4206_v3 = vadd.f32 %v6249_v1, %v4205_v2 }
 0x90d   :  { %4209 = vst [vmem:[%s8200_s25] sm:$0xff] %v4206_v3 }
 0x912   :  { %v4207_v4 = vpop.f32.mrf.mxu3 }

</bundles_post_ra>
